<compile_context>
chip_gen: v7x
topology: tpu7x:2x2x1
jax: 0.10.0
libtpu: 0.0.40
codegen_flags: <defaults>
</compile_context>

<pallas_src>
import math

import jax
import jax.numpy as jnp
import numpy as np
from jax.experimental import pallas as pl
from jax.experimental.pallas import tpu as pltpu

# ---------------- small, module-consistent config ----------------
B, S, HID = 2, 16, 32          # batch, seq_len, hidden_size
HEAD_DIM = 16
HALF = HEAD_DIM // 2
NQ, NKV = 4, 2                 # num_q_head, num_kv_head (GQA)
GROUP = NQ // NKV
FFH = 64                       # ffh_size
GROUP_SIZE = 16                # GroupRMSNorm group size
N_GROUPS = HID // GROUP_SIZE
EPS = 1e-5
ROPE_BASE = 10000

Q_SIZE = NQ * HEAD_DIM
KV_SIZE = NKV * HEAD_DIM
QKV_TOT = Q_SIZE + 2 * KV_SIZE
SM_SCALE = 1.0 / math.sqrt(HEAD_DIM)   # softmax_scale=None default


# ------------------------- fused layer kernel -------------------------
def _decoder_layer_kernel(x_ref, attn_nw_ref, mlp_nw_ref, qkv_w_ref, o_w_ref,
                          wg_ref, wu_ref, wd_ref, cos_ref, sin_ref, out_ref):
    """Single grid step; whole layer stays VMEM-resident (batch folded)."""
    x = x_ref[...]            # [B*S, HID] f32
    cos = cos_ref[...]        # [B*S, HALF] f32 (rope table tiled per batch)
    sin = sin_ref[...]

    def group_rmsnorm(xv, w):
        # Segment reduction over lane slices: each element touched once,
        # GROUP_SIZE-wide reductions, no full-row masked sums.
        # TODO(synk): at large N_GROUPS use [rows, N_GROUPS, GROUP_SIZE]
        # reshape + single axis reduce instead of the unrolled lane slices.
        parts = []
        for gi in range(N_GROUPS):
            seg = xv[:, gi * GROUP_SIZE:(gi + 1) * GROUP_SIZE]
            ms = jnp.mean(seg * seg, axis=-1, keepdims=True)
            parts.append(seg * jax.lax.rsqrt(ms + EPS))
        return jnp.concatenate(parts, axis=-1) * w

    def rope(t):
        # Full rotated tile: the two halves share a vreg, so this concat is a
        # cheap lane select -> one full-depth QK^T instead of two half-depth.
        t1 = t[:, :HALF]
        t2 = t[:, HALF:]
        return jnp.concatenate([t1 * cos - t2 * sin, t2 * cos + t1 * sin],
                               axis=-1)

    # ---------------- self-attention sub-layer ----------------
    h = group_rmsnorm(x, attn_nw_ref[...])
    qkv = jnp.dot(h.astype(jnp.bfloat16), qkv_w_ref[...],
                  preferred_element_type=jnp.float32)          # [B*S, 128]

    # RoPE all heads over the folded-batch rows (positions repeat per batch)
    q_rot = [rope(qkv[:, hq * HEAD_DIM:(hq + 1) * HEAD_DIM]) for hq in range(NQ)]
    k_rot = [rope(qkv[:, Q_SIZE + j * HEAD_DIM:Q_SIZE + (j + 1) * HEAD_DIM])
             for j in range(NKV)]
    v_h = [qkv[:, Q_SIZE + KV_SIZE + j * HEAD_DIM:
               Q_SIZE + KV_SIZE + (j + 1) * HEAD_DIM] for j in range(NKV)]

    # Offline full (non-causal) attention per (batch, kv-head); the GROUP
    # q heads sharing a kv head are stacked along rows (one QK^T / one PV).
    o_heads = [[None] * NQ for _ in range(B)]
    for b in range(B):
        r0 = b * S
        for j in range(NKV):
            # one K transpose per kv head, reused by its GROUP q heads
            kT = k_rot[j][r0:r0 + S, :].T.astype(jnp.bfloat16)      # [D, S]
            v_b = v_h[j][r0:r0 + S, :].astype(jnp.bfloat16)         # [S, D]
            q_stack = jnp.concatenate(
                [q_rot[j * GROUP + g][r0:r0 + S, :] for g in range(GROUP)],
                axis=0).astype(jnp.bfloat16)                        # [GROUP*S, D]
            s_mat = jnp.dot(q_stack, kT,
                            preferred_element_type=jnp.float32) * SM_SCALE
            m = jnp.max(s_mat, axis=-1, keepdims=True)              # f32 softmax
            p = jnp.exp(s_mat - m)
            l = jnp.sum(p, axis=-1, keepdims=True)
            o_stack = jnp.dot(p.astype(jnp.bfloat16), v_b,
                              preferred_element_type=jnp.float32)   # [GROUP*S, D]
            # scale the [rows, D] PV output instead of the [rows, S] P tile
            o_stack = o_stack * pl.reciprocal(l, approx=True)       # EUP slot
            for g in range(GROUP):
                o_heads[b][j * GROUP + g] = o_stack[g * S:(g + 1) * S, :]

    # assemble [B*S, Q_SIZE] slab -> ONE lane-dense o_proj matmul
    o_slab = jnp.concatenate(
        [jnp.concatenate(o_heads[b], axis=-1) for b in range(B)], axis=0)
    attn_o = jnp.dot(o_slab.astype(jnp.bfloat16), o_w_ref[...],
                     preferred_element_type=jnp.float32)            # [B*S, HID]
    h2 = x + attn_o            # residual 1

    # ---------------- MLP (SwiGLU) sub-layer ----------------
    hn = group_rmsnorm(h2, mlp_nw_ref[...])
    hn_b = hn.astype(jnp.bfloat16)
    gate = jnp.dot(hn_b, wg_ref[...], preferred_element_type=jnp.float32)
    up = jnp.dot(hn_b, wu_ref[...], preferred_element_type=jnp.float32)
    act = gate * jax.nn.sigmoid(gate) * up                          # SiLU * up
    mlp_o = jnp.dot(act.astype(jnp.bfloat16), wd_ref[...],
                    preferred_element_type=jnp.float32)
    out_ref[...] = (h2 + mlp_o).astype(out_ref.dtype)               # residual 2


def decoder_layer_pallas(x, params, cos, sin):
    b, s, hid = x.shape
    rows = b * s
    x2 = x.reshape(rows, hid)              # fold batch into rows
    cos2 = jnp.tile(cos, (b, 1))           # positions repeat per batch
    sin2 = jnp.tile(sin, (b, 1))
    bf16 = lambda a: a.astype(jnp.bfloat16)  # MXU-operand weights in bf16

    def full(shape):                        # replicated / full-array operand
        return pl.BlockSpec(shape, lambda i: (0,) * len(shape))

    out2 = pl.pallas_call(
        _decoder_layer_kernel,
        out_shape=jax.ShapeDtypeStruct((rows, hid), x.dtype),
        grid=(1,),                          # single step: no serial batch loop
        in_specs=[
            full((rows, hid)),              # x (batch folded)
            full((1, hid)),                 # attn_norm weight (f32)
            full((1, hid)),                 # mlp_norm weight (f32)
            full((hid, QKV_TOT)),           # qkv_proj (bf16)
            full((Q_SIZE, hid)),            # o_proj (bf16)
            full((hid, FFH)),               # w_gate (bf16)
            full((hid, FFH)),               # w_up (bf16)
            full((FFH, hid)),               # w_down (bf16)
            full((rows, HALF)),             # rope cos (f32)
            full((rows, HALF)),             # rope sin (f32)
        ],
        out_specs=full((rows, hid)),
        compiler_params=pltpu.CompilerParams(
            dimension_semantics=("arbitrary",)),
    )(x2, params["attn_norm_w"], params["mlp_norm_w"],
      bf16(params["qkv_proj"]), bf16(params["o_proj"]),
      bf16(params["w_gate"]), bf16(params["w_up"]), bf16(params["w_down"]),
      cos2, sin2)
    return out2.reshape(b, s, hid)


# ------------------------------ host-side glue ------------------------------
def rope_tables(seq_len, head_dim=HEAD_DIM, base=ROPE_BASE, offset=0):
    # NTK-aware RoPE with ratio=1, dynamic=False == vanilla RoPE tables
    half = head_dim // 2
    inv_freq = 1.0 / (base ** (np.arange(0, half, dtype=np.float32) / half))
    pos = np.arange(offset, offset + seq_len, dtype=np.float32)
    ang = pos[:, None] * inv_freq[None, :]
    return (jnp.asarray(np.cos(ang), jnp.float32),
            jnp.asarray(np.sin(ang), jnp.float32))


def ref_forward(x, params, cos, sin):
    """Pure-JAX f32 reference of the same layer math (module semantics)."""
    b, s, hid = x.shape

    def norm(xv, w):
        xr = xv.reshape(b, s, N_GROUPS, GROUP_SIZE)
        ms = jnp.mean(xr * xr, axis=-1, keepdims=True)
        return (xr * jax.lax.rsqrt(ms + EPS)).reshape(b, s, hid) * w.reshape(1, 1, hid)

    def rope(t):  # [b, s, h, d]
        c = jnp.concatenate([cos, cos], -1)[None, :, None, :]
        sn = jnp.concatenate([sin, sin], -1)[None, :, None, :]
        t1, t2 = t[..., :HALF], t[..., HALF:]
        rot = jnp.concatenate([-t2, t1], -1)
        return t * c + rot * sn

    h = norm(x, params["attn_norm_w"])
    qkv = h @ params["qkv_proj"]
    q = qkv[..., :Q_SIZE].reshape(b, s, NQ, HEAD_DIM)
    k = qkv[..., Q_SIZE:Q_SIZE + KV_SIZE].reshape(b, s, NKV, HEAD_DIM)
    v = qkv[..., Q_SIZE + KV_SIZE:].reshape(b, s, NKV, HEAD_DIM)
    q, k = rope(q), rope(k)
    k = jnp.repeat(k, NQ // NKV, axis=2)
    v = jnp.repeat(v, NQ // NKV, axis=2)
    scores = jnp.einsum("bqhd,bkhd->bhqk", q, k) * SM_SCALE
    p = jax.nn.softmax(scores, axis=-1)
    o = jnp.einsum("bhqk,bkhd->bqhd", p, v).reshape(b, s, Q_SIZE)
    h2 = x + o @ params["o_proj"]
    hn = norm(h2, params["mlp_norm_w"])
    mlp = (jax.nn.silu(hn @ params["w_gate"]) * (hn @ params["w_up"])) @ params["w_down"]
    return h2 + mlp


def init_params(key):
    ks = jax.random.split(key, 7)
    return {
        "attn_norm_w": jax.random.uniform(ks[0], (1, HID), jnp.float32, -1.0, 1.0),
        "mlp_norm_w":  jax.random.uniform(ks[1], (1, HID), jnp.float32, -1.0, 1.0),
        "qkv_proj":    0.15 * jax.random.normal(ks[2], (HID, QKV_TOT), jnp.float32),
        "o_proj":      0.15 * jax.random.normal(ks[3], (Q_SIZE, HID), jnp.float32),
        "w_gate":      0.05 * jax.random.normal(ks[4], (HID, FFH), jnp.float32),
        "w_up":        0.05 * jax.random.normal(ks[5], (HID, FFH), jnp.float32),
        "w_down":      0.05 * jax.random.normal(ks[6], (FFH, HID), jnp.float32),
    }


if __name__ == "__main__":
    root = jax.random.PRNGKey(0)
    kx, kp = jax.random.split(root)
    x = jax.random.normal(kx, (B, S, HID), jnp.float32)
    params = init_params(kp)
    cos, sin = rope_tables(S)

    fwd = jax.jit(decoder_layer_pallas)
    out = jax.block_until_ready(fwd(x, params, cos, sin))

    # sanity check vs. pure-f32 reference; tolerance covers bf16 MXU operands
    # and the approx softmax reciprocal.
    ref = ref_forward(x, params, cos, sin)
    np.testing.assert_allclose(np.asarray(out), np.asarray(ref),
                               rtol=3e-2, atol=3e-2)

    print("KERNEL_OK")
</pallas_src>

<mosaic_0001>
module attributes {stable_mosaic.version = 11 : i64} {
  func.func @_decoder_layer_kernel(%arg0: i32, %arg1: memref<32x32xf32, #tpu.memory_space<vmem>>, %arg2: memref<1x32xf32, #tpu.memory_space<vmem>>, %arg3: memref<1x32xf32, #tpu.memory_space<vmem>>, %arg4: memref<32x128xbf16, #tpu.memory_space<vmem>>, %arg5: memref<64x32xbf16, #tpu.memory_space<vmem>>, %arg6: memref<32x64xbf16, #tpu.memory_space<vmem>>, %arg7: memref<32x64xbf16, #tpu.memory_space<vmem>>, %arg8: memref<64x32xbf16, #tpu.memory_space<vmem>>, %arg9: memref<32x8xf32, #tpu.memory_space<vmem>>, %arg10: memref<32x8xf32, #tpu.memory_space<vmem>>, %arg11: memref<32x32xf32, #tpu.memory_space<vmem>>) attributes {dimension_semantics = [#tpu.dimension_semantics<arbitrary>], iteration_bounds = array<i64: 1>, scalar_prefetch = 0 : i64, scratch_operands = 0 : i64, tpu.core_type = #tpu.core_type<tc>, window_params = [{pipeline_mode = #tpu.pipeline_mode<synchronous>, transform_indices = @transform_0, window_bounds = array<i64: 32, 32>}, {pipeline_mode = #tpu.pipeline_mode<synchronous>, transform_indices = @transform_1, window_bounds = array<i64: 1, 32>}, {pipeline_mode = #tpu.pipeline_mode<synchronous>, transform_indices = @transform_2, window_bounds = array<i64: 1, 32>}, {pipeline_mode = #tpu.pipeline_mode<synchronous>, transform_indices = @transform_3, window_bounds = array<i64: 32, 128>}, {pipeline_mode = #tpu.pipeline_mode<synchronous>, transform_indices = @transform_4, window_bounds = array<i64: 64, 32>}, {pipeline_mode = #tpu.pipeline_mode<synchronous>, transform_indices = @transform_5, window_bounds = array<i64: 32, 64>}, {pipeline_mode = #tpu.pipeline_mode<synchronous>, transform_indices = @transform_6, window_bounds = array<i64: 32, 64>}, {pipeline_mode = #tpu.pipeline_mode<synchronous>, transform_indices = @transform_7, window_bounds = array<i64: 64, 32>}, {pipeline_mode = #tpu.pipeline_mode<synchronous>, transform_indices = @transform_8, window_bounds = array<i64: 32, 8>}, {pipeline_mode = #tpu.pipeline_mode<synchronous>, transform_indices = @transform_9, window_bounds = array<i64: 32, 8>}, {pipeline_mode = #tpu.pipeline_mode<synchronous>, transform_indices = @transform_10, window_bounds = array<i64: 32, 32>}]} {
    %c0 = arith.constant 0 : index
    %c0_0 = arith.constant 0 : index
    %0 = vector.load %arg1[%c0, %c0_0] : memref<32x32xf32, #tpu.memory_space<vmem>>, vector<32x32xf32>
    %c0_1 = arith.constant 0 : index
    %c0_2 = arith.constant 0 : index
    %1 = vector.load %arg9[%c0_1, %c0_2] : memref<32x8xf32, #tpu.memory_space<vmem>>, vector<32x8xf32>
    %c0_3 = arith.constant 0 : index
    %c0_4 = arith.constant 0 : index
    %2 = vector.load %arg10[%c0_3, %c0_4] : memref<32x8xf32, #tpu.memory_space<vmem>>, vector<32x8xf32>
    %c0_5 = arith.constant 0 : index
    %c0_6 = arith.constant 0 : index
    %3 = vector.load %arg2[%c0_5, %c0_6] : memref<1x32xf32, #tpu.memory_space<vmem>>, vector<1x32xf32>
    %4 = vector.extract_strided_slice %0 {offsets = [0, 0], sizes = [32, 16], strides = [1, 1]} : vector<32x32xf32> to vector<32x16xf32>
    %5 = arith.mulf %4, %4 : vector<32x16xf32>
    %cst = arith.constant dense<0.000000e+00> : vector<32xf32>
    %6 = vector.multi_reduction <add>, %5, %cst [1] : vector<32x16xf32> to vector<32xf32>
    %7 = vector.shape_cast %6 : vector<32xf32> to vector<32x1xf32>
    %cst_7 = arith.constant 1.600000e+01 : f32
    %8 = vector.broadcast %cst_7 : f32 to vector<32x1xf32>
    %9 = arith.divf %7, %8 : vector<32x1xf32>
    %cst_8 = arith.constant 9.99999974E-6 : f32
    %10 = vector.broadcast %cst_8 : f32 to vector<32x1xf32>
    %11 = arith.addf %9, %10 : vector<32x1xf32>
    %12 = math.rsqrt %11 : vector<32x1xf32>
    %13 = vector.broadcast %12 : vector<32x1xf32> to vector<32x16xf32>
    %14 = arith.mulf %4, %13 : vector<32x16xf32>
    %15 = vector.extract_strided_slice %0 {offsets = [0, 16], sizes = [32, 16], strides = [1, 1]} : vector<32x32xf32> to vector<32x16xf32>
    %16 = arith.mulf %15, %15 : vector<32x16xf32>
    %cst_9 = arith.constant dense<0.000000e+00> : vector<32xf32>
    %17 = vector.multi_reduction <add>, %16, %cst_9 [1] : vector<32x16xf32> to vector<32xf32>
    %18 = vector.shape_cast %17 : vector<32xf32> to vector<32x1xf32>
    %cst_10 = arith.constant 1.600000e+01 : f32
    %19 = vector.broadcast %cst_10 : f32 to vector<32x1xf32>
    %20 = arith.divf %18, %19 : vector<32x1xf32>
    %cst_11 = arith.constant 9.99999974E-6 : f32
    %21 = vector.broadcast %cst_11 : f32 to vector<32x1xf32>
    %22 = arith.addf %20, %21 : vector<32x1xf32>
    %23 = math.rsqrt %22 : vector<32x1xf32>
    %24 = vector.broadcast %23 : vector<32x1xf32> to vector<32x16xf32>
    %25 = arith.mulf %15, %24 : vector<32x16xf32>
    %26 = tpu.concatenate %14, %25 in 1 : vector<32x16xf32>, vector<32x16xf32> -> vector<32x32xf32>
    %27 = vector.broadcast %3 : vector<1x32xf32> to vector<32x32xf32>
    %28 = arith.mulf %26, %27 : vector<32x32xf32>
    %29 = arith.truncf %28 : vector<32x32xf32> to vector<32x32xbf16>
    %c0_12 = arith.constant 0 : index
    %c0_13 = arith.constant 0 : index
    %30 = vector.load %arg4[%c0_12, %c0_13] : memref<32x128xbf16, #tpu.memory_space<vmem>>, vector<32x128xbf16>
    %cst_14 = arith.constant dense<0.000000e+00> : vector<32x128xf32>
    %31 = tpu.matmul %29, %30, %cst_14 {dimension_numbers = #tpu.dot_dimension_numbers<[1], [0], [0], [1], [0, 0, 1, 1], [], []>} : vector<32x32xbf16>, vector<32x128xbf16>, vector<32x128xf32> -> vector<32x128xf32>
    %32 = vector.extract_strided_slice %31 {offsets = [0, 0], sizes = [32, 16], strides = [1, 1]} : vector<32x128xf32> to vector<32x16xf32>
    %33 = vector.extract_strided_slice %32 {offsets = [0, 0], sizes = [32, 8], strides = [1, 1]} : vector<32x16xf32> to vector<32x8xf32>
    %34 = vector.extract_strided_slice %32 {offsets = [0, 8], sizes = [32, 8], strides = [1, 1]} : vector<32x16xf32> to vector<32x8xf32>
    %35 = arith.mulf %33, %1 : vector<32x8xf32>
    %36 = arith.mulf %34, %2 : vector<32x8xf32>
    %37 = arith.subf %35, %36 : vector<32x8xf32>
    %38 = arith.mulf %34, %1 : vector<32x8xf32>
    %39 = arith.mulf %33, %2 : vector<32x8xf32>
    %40 = arith.addf %38, %39 : vector<32x8xf32>
    %41 = tpu.concatenate %37, %40 in 1 : vector<32x8xf32>, vector<32x8xf32> -> vector<32x16xf32>
    %42 = vector.extract_strided_slice %31 {offsets = [0, 16], sizes = [32, 16], strides = [1, 1]} : vector<32x128xf32> to vector<32x16xf32>
    %43 = vector.extract_strided_slice %42 {offsets = [0, 0], sizes = [32, 8], strides = [1, 1]} : vector<32x16xf32> to vector<32x8xf32>
    %44 = vector.extract_strided_slice %42 {offsets = [0, 8], sizes = [32, 8], strides = [1, 1]} : vector<32x16xf32> to vector<32x8xf32>
    %45 = arith.mulf %43, %1 : vector<32x8xf32>
    %46 = arith.mulf %44, %2 : vector<32x8xf32>
    %47 = arith.subf %45, %46 : vector<32x8xf32>
    %48 = arith.mulf %44, %1 : vector<32x8xf32>
    %49 = arith.mulf %43, %2 : vector<32x8xf32>
    %50 = arith.addf %48, %49 : vector<32x8xf32>
    %51 = tpu.concatenate %47, %50 in 1 : vector<32x8xf32>, vector<32x8xf32> -> vector<32x16xf32>
    %52 = vector.extract_strided_slice %31 {offsets = [0, 32], sizes = [32, 16], strides = [1, 1]} : vector<32x128xf32> to vector<32x16xf32>
    %53 = vector.extract_strided_slice %52 {offsets = [0, 0], sizes = [32, 8], strides = [1, 1]} : vector<32x16xf32> to vector<32x8xf32>
    %54 = vector.extract_strided_slice %52 {offsets = [0, 8], sizes = [32, 8], strides = [1, 1]} : vector<32x16xf32> to vector<32x8xf32>
    %55 = arith.mulf %53, %1 : vector<32x8xf32>
    %56 = arith.mulf %54, %2 : vector<32x8xf32>
    %57 = arith.subf %55, %56 : vector<32x8xf32>
    %58 = arith.mulf %54, %1 : vector<32x8xf32>
    %59 = arith.mulf %53, %2 : vector<32x8xf32>
    %60 = arith.addf %58, %59 : vector<32x8xf32>
    %61 = tpu.concatenate %57, %60 in 1 : vector<32x8xf32>, vector<32x8xf32> -> vector<32x16xf32>
    %62 = vector.extract_strided_slice %31 {offsets = [0, 48], sizes = [32, 16], strides = [1, 1]} : vector<32x128xf32> to vector<32x16xf32>
    %63 = vector.extract_strided_slice %62 {offsets = [0, 0], sizes = [32, 8], strides = [1, 1]} : vector<32x16xf32> to vector<32x8xf32>
    %64 = vector.extract_strided_slice %62 {offsets = [0, 8], sizes = [32, 8], strides = [1, 1]} : vector<32x16xf32> to vector<32x8xf32>
    %65 = arith.mulf %63, %1 : vector<32x8xf32>
    %66 = arith.mulf %64, %2 : vector<32x8xf32>
    %67 = arith.subf %65, %66 : vector<32x8xf32>
    %68 = arith.mulf %64, %1 : vector<32x8xf32>
    %69 = arith.mulf %63, %2 : vector<32x8xf32>
    %70 = arith.addf %68, %69 : vector<32x8xf32>
    %71 = tpu.concatenate %67, %70 in 1 : vector<32x8xf32>, vector<32x8xf32> -> vector<32x16xf32>
    %72 = vector.extract_strided_slice %31 {offsets = [0, 64], sizes = [32, 16], strides = [1, 1]} : vector<32x128xf32> to vector<32x16xf32>
    %73 = vector.extract_strided_slice %72 {offsets = [0, 0], sizes = [32, 8], strides = [1, 1]} : vector<32x16xf32> to vector<32x8xf32>
    %74 = vector.extract_strided_slice %72 {offsets = [0, 8], sizes = [32, 8], strides = [1, 1]} : vector<32x16xf32> to vector<32x8xf32>
    %75 = arith.mulf %73, %1 : vector<32x8xf32>
    %76 = arith.mulf %74, %2 : vector<32x8xf32>
    %77 = arith.subf %75, %76 : vector<32x8xf32>
    %78 = arith.mulf %74, %1 : vector<32x8xf32>
    %79 = arith.mulf %73, %2 : vector<32x8xf32>
    %80 = arith.addf %78, %79 : vector<32x8xf32>
    %81 = tpu.concatenate %77, %80 in 1 : vector<32x8xf32>, vector<32x8xf32> -> vector<32x16xf32>
    %82 = vector.extract_strided_slice %31 {offsets = [0, 80], sizes = [32, 16], strides = [1, 1]} : vector<32x128xf32> to vector<32x16xf32>
    %83 = vector.extract_strided_slice %82 {offsets = [0, 0], sizes = [32, 8], strides = [1, 1]} : vector<32x16xf32> to vector<32x8xf32>
    %84 = vector.extract_strided_slice %82 {offsets = [0, 8], sizes = [32, 8], strides = [1, 1]} : vector<32x16xf32> to vector<32x8xf32>
    %85 = arith.mulf %83, %1 : vector<32x8xf32>
    %86 = arith.mulf %84, %2 : vector<32x8xf32>
    %87 = arith.subf %85, %86 : vector<32x8xf32>
    %88 = arith.mulf %84, %1 : vector<32x8xf32>
    %89 = arith.mulf %83, %2 : vector<32x8xf32>
    %90 = arith.addf %88, %89 : vector<32x8xf32>
    %91 = tpu.concatenate %87, %90 in 1 : vector<32x8xf32>, vector<32x8xf32> -> vector<32x16xf32>
    %92 = vector.extract_strided_slice %31 {offsets = [0, 96], sizes = [32, 16], strides = [1, 1]} : vector<32x128xf32> to vector<32x16xf32>
    %93 = vector.extract_strided_slice %31 {offsets = [0, 112], sizes = [32, 16], strides = [1, 1]} : vector<32x128xf32> to vector<32x16xf32>
    %94 = vector.extract_strided_slice %81 {offsets = [0, 0], sizes = [16, 16], strides = [1, 1]} : vector<32x16xf32> to vector<16x16xf32>
    %95 = tpu.transpose %94, [1, 0] : vector<16x16xf32> -> vector<16x16xf32>
    %96 = arith.truncf %95 : vector<16x16xf32> to vector<16x16xbf16>
    %97 = vector.extract_strided_slice %92 {offsets = [0, 0], sizes = [16, 16], strides = [1, 1]} : vector<32x16xf32> to vector<16x16xf32>
    %98 = arith.truncf %97 : vector<16x16xf32> to vector<16x16xbf16>
    %99 = vector.extract_strided_slice %41 {offsets = [0, 0], sizes = [16, 16], strides = [1, 1]} : vector<32x16xf32> to vector<16x16xf32>
    %100 = vector.extract_strided_slice %51 {offsets = [0, 0], sizes = [16, 16], strides = [1, 1]} : vector<32x16xf32> to vector<16x16xf32>
    %101 = tpu.concatenate %99, %100 in 0 : vector<16x16xf32>, vector<16x16xf32> -> vector<32x16xf32>
    %102 = arith.truncf %101 : vector<32x16xf32> to vector<32x16xbf16>
    %cst_15 = arith.constant dense<0.000000e+00> : vector<32x16xf32>
    %103 = tpu.matmul %102, %96, %cst_15 {dimension_numbers = #tpu.dot_dimension_numbers<[1], [0], [0], [1], [0, 0, 1, 1], [], []>} : vector<32x16xbf16>, vector<16x16xbf16>, vector<32x16xf32> -> vector<32x16xf32>
    %cst_16 = arith.constant 2.500000e-01 : f32
    %104 = vector.broadcast %cst_16 : f32 to vector<32x16xf32>
    %105 = arith.mulf %103, %104 : vector<32x16xf32>
    %cst_17 = arith.constant dense<0xFF800000> : vector<32xf32>
    %106 = vector.multi_reduction <maximumf>, %105, %cst_17 [1] : vector<32x16xf32> to vector<32xf32>
    %107 = vector.shape_cast %106 : vector<32xf32> to vector<32x1xf32>
    %108 = vector.broadcast %107 : vector<32x1xf32> to vector<32x16xf32>
    %109 = arith.subf %105, %108 : vector<32x16xf32>
    %110 = math.exp %109 : vector<32x16xf32>
    %cst_18 = arith.constant dense<0.000000e+00> : vector<32xf32>
    %111 = vector.multi_reduction <add>, %110, %cst_18 [1] : vector<32x16xf32> to vector<32xf32>
    %112 = vector.shape_cast %111 : vector<32xf32> to vector<32x1xf32>
    %113 = arith.truncf %110 : vector<32x16xf32> to vector<32x16xbf16>
    %cst_19 = arith.constant dense<0.000000e+00> : vector<32x16xf32>
    %114 = tpu.matmul %113, %98, %cst_19 {dimension_numbers = #tpu.dot_dimension_numbers<[1], [0], [0], [1], [0, 0, 1, 1], [], []>} : vector<32x16xbf16>, vector<16x16xbf16>, vector<32x16xf32> -> vector<32x16xf32>
    %115 = tpu.reciprocal %112 {approx = true} : vector<32x1xf32> -> vector<32x1xf32>
    %116 = vector.broadcast %115 : vector<32x1xf32> to vector<32x16xf32>
    %117 = arith.mulf %114, %116 : vector<32x16xf32>
    %118 = vector.extract_strided_slice %117 {offsets = [0, 0], sizes = [16, 16], strides = [1, 1]} : vector<32x16xf32> to vector<16x16xf32>
    %119 = vector.extract_strided_slice %117 {offsets = [16, 0], sizes = [16, 16], strides = [1, 1]} : vector<32x16xf32> to vector<16x16xf32>
    %120 = vector.extract_strided_slice %91 {offsets = [0, 0], sizes = [16, 16], strides = [1, 1]} : vector<32x16xf32> to vector<16x16xf32>
    %121 = tpu.transpose %120, [1, 0] : vector<16x16xf32> -> vector<16x16xf32>
    %122 = arith.truncf %121 : vector<16x16xf32> to vector<16x16xbf16>
    %123 = vector.extract_strided_slice %93 {offsets = [0, 0], sizes = [16, 16], strides = [1, 1]} : vector<32x16xf32> to vector<16x16xf32>
    %124 = arith.truncf %123 : vector<16x16xf32> to vector<16x16xbf16>
    %125 = vector.extract_strided_slice %61 {offsets = [0, 0], sizes = [16, 16], strides = [1, 1]} : vector<32x16xf32> to vector<16x16xf32>
    %126 = vector.extract_strided_slice %71 {offsets = [0, 0], sizes = [16, 16], strides = [1, 1]} : vector<32x16xf32> to vector<16x16xf32>
    %127 = tpu.concatenate %125, %126 in 0 : vector<16x16xf32>, vector<16x16xf32> -> vector<32x16xf32>
    %128 = arith.truncf %127 : vector<32x16xf32> to vector<32x16xbf16>
    %cst_20 = arith.constant dense<0.000000e+00> : vector<32x16xf32>
    %129 = tpu.matmul %128, %122, %cst_20 {dimension_numbers = #tpu.dot_dimension_numbers<[1], [0], [0], [1], [0, 0, 1, 1], [], []>} : vector<32x16xbf16>, vector<16x16xbf16>, vector<32x16xf32> -> vector<32x16xf32>
    %cst_21 = arith.constant 2.500000e-01 : f32
    %130 = vector.broadcast %cst_21 : f32 to vector<32x16xf32>
    %131 = arith.mulf %129, %130 : vector<32x16xf32>
    %cst_22 = arith.constant dense<0xFF800000> : vector<32xf32>
    %132 = vector.multi_reduction <maximumf>, %131, %cst_22 [1] : vector<32x16xf32> to vector<32xf32>
    %133 = vector.shape_cast %132 : vector<32xf32> to vector<32x1xf32>
    %134 = vector.broadcast %133 : vector<32x1xf32> to vector<32x16xf32>
    %135 = arith.subf %131, %134 : vector<32x16xf32>
    %136 = math.exp %135 : vector<32x16xf32>
    %cst_23 = arith.constant dense<0.000000e+00> : vector<32xf32>
    %137 = vector.multi_reduction <add>, %136, %cst_23 [1] : vector<32x16xf32> to vector<32xf32>
    %138 = vector.shape_cast %137 : vector<32xf32> to vector<32x1xf32>
    %139 = arith.truncf %136 : vector<32x16xf32> to vector<32x16xbf16>
    %cst_24 = arith.constant dense<0.000000e+00> : vector<32x16xf32>
    %140 = tpu.matmul %139, %124, %cst_24 {dimension_numbers = #tpu.dot_dimension_numbers<[1], [0], [0], [1], [0, 0, 1, 1], [], []>} : vector<32x16xbf16>, vector<16x16xbf16>, vector<32x16xf32> -> vector<32x16xf32>
    %141 = tpu.reciprocal %138 {approx = true} : vector<32x1xf32> -> vector<32x1xf32>
    %142 = vector.broadcast %141 : vector<32x1xf32> to vector<32x16xf32>
    %143 = arith.mulf %140, %142 : vector<32x16xf32>
    %144 = vector.extract_strided_slice %143 {offsets = [0, 0], sizes = [16, 16], strides = [1, 1]} : vector<32x16xf32> to vector<16x16xf32>
    %145 = vector.extract_strided_slice %143 {offsets = [16, 0], sizes = [16, 16], strides = [1, 1]} : vector<32x16xf32> to vector<16x16xf32>
    %146 = vector.extract_strided_slice %81 {offsets = [16, 0], sizes = [16, 16], strides = [1, 1]} : vector<32x16xf32> to vector<16x16xf32>
    %147 = tpu.transpose %146, [1, 0] : vector<16x16xf32> -> vector<16x16xf32>
    %148 = arith.truncf %147 : vector<16x16xf32> to vector<16x16xbf16>
    %149 = vector.extract_strided_slice %92 {offsets = [16, 0], sizes = [16, 16], strides = [1, 1]} : vector<32x16xf32> to vector<16x16xf32>
    %150 = arith.truncf %149 : vector<16x16xf32> to vector<16x16xbf16>
    %151 = vector.extract_strided_slice %41 {offsets = [16, 0], sizes = [16, 16], strides = [1, 1]} : vector<32x16xf32> to vector<16x16xf32>
    %152 = vector.extract_strided_slice %51 {offsets = [16, 0], sizes = [16, 16], strides = [1, 1]} : vector<32x16xf32> to vector<16x16xf32>
    %153 = tpu.concatenate %151, %152 in 0 : vector<16x16xf32>, vector<16x16xf32> -> vector<32x16xf32>
    %154 = arith.truncf %153 : vector<32x16xf32> to vector<32x16xbf16>
    %cst_25 = arith.constant dense<0.000000e+00> : vector<32x16xf32>
    %155 = tpu.matmul %154, %148, %cst_25 {dimension_numbers = #tpu.dot_dimension_numbers<[1], [0], [0], [1], [0, 0, 1, 1], [], []>} : vector<32x16xbf16>, vector<16x16xbf16>, vector<32x16xf32> -> vector<32x16xf32>
    %cst_26 = arith.constant 2.500000e-01 : f32
    %156 = vector.broadcast %cst_26 : f32 to vector<32x16xf32>
    %157 = arith.mulf %155, %156 : vector<32x16xf32>
    %cst_27 = arith.constant dense<0xFF800000> : vector<32xf32>
    %158 = vector.multi_reduction <maximumf>, %157, %cst_27 [1] : vector<32x16xf32> to vector<32xf32>
    %159 = vector.shape_cast %158 : vector<32xf32> to vector<32x1xf32>
    %160 = vector.broadcast %159 : vector<32x1xf32> to vector<32x16xf32>
    %161 = arith.subf %157, %160 : vector<32x16xf32>
    %162 = math.exp %161 : vector<32x16xf32>
    %cst_28 = arith.constant dense<0.000000e+00> : vector<32xf32>
    %163 = vector.multi_reduction <add>, %162, %cst_28 [1] : vector<32x16xf32> to vector<32xf32>
    %164 = vector.shape_cast %163 : vector<32xf32> to vector<32x1xf32>
    %165 = arith.truncf %162 : vector<32x16xf32> to vector<32x16xbf16>
    %cst_29 = arith.constant dense<0.000000e+00> : vector<32x16xf32>
    %166 = tpu.matmul %165, %150, %cst_29 {dimension_numbers = #tpu.dot_dimension_numbers<[1], [0], [0], [1], [0, 0, 1, 1], [], []>} : vector<32x16xbf16>, vector<16x16xbf16>, vector<32x16xf32> -> vector<32x16xf32>
    %167 = tpu.reciprocal %164 {approx = true} : vector<32x1xf32> -> vector<32x1xf32>
    %168 = vector.broadcast %167 : vector<32x1xf32> to vector<32x16xf32>
    %169 = arith.mulf %166, %168 : vector<32x16xf32>
    %170 = vector.extract_strided_slice %169 {offsets = [0, 0], sizes = [16, 16], strides = [1, 1]} : vector<32x16xf32> to vector<16x16xf32>
    %171 = vector.extract_strided_slice %169 {offsets = [16, 0], sizes = [16, 16], strides = [1, 1]} : vector<32x16xf32> to vector<16x16xf32>
    %172 = vector.extract_strided_slice %91 {offsets = [16, 0], sizes = [16, 16], strides = [1, 1]} : vector<32x16xf32> to vector<16x16xf32>
    %173 = tpu.transpose %172, [1, 0] : vector<16x16xf32> -> vector<16x16xf32>
    %174 = arith.truncf %173 : vector<16x16xf32> to vector<16x16xbf16>
    %175 = vector.extract_strided_slice %93 {offsets = [16, 0], sizes = [16, 16], strides = [1, 1]} : vector<32x16xf32> to vector<16x16xf32>
    %176 = arith.truncf %175 : vector<16x16xf32> to vector<16x16xbf16>
    %177 = vector.extract_strided_slice %61 {offsets = [16, 0], sizes = [16, 16], strides = [1, 1]} : vector<32x16xf32> to vector<16x16xf32>
    %178 = vector.extract_strided_slice %71 {offsets = [16, 0], sizes = [16, 16], strides = [1, 1]} : vector<32x16xf32> to vector<16x16xf32>
    %179 = tpu.concatenate %177, %178 in 0 : vector<16x16xf32>, vector<16x16xf32> -> vector<32x16xf32>
    %180 = arith.truncf %179 : vector<32x16xf32> to vector<32x16xbf16>
    %cst_30 = arith.constant dense<0.000000e+00> : vector<32x16xf32>
    %181 = tpu.matmul %180, %174, %cst_30 {dimension_numbers = #tpu.dot_dimension_numbers<[1], [0], [0], [1], [0, 0, 1, 1], [], []>} : vector<32x16xbf16>, vector<16x16xbf16>, vector<32x16xf32> -> vector<32x16xf32>
    %cst_31 = arith.constant 2.500000e-01 : f32
    %182 = vector.broadcast %cst_31 : f32 to vector<32x16xf32>
    %183 = arith.mulf %181, %182 : vector<32x16xf32>
    %cst_32 = arith.constant dense<0xFF800000> : vector<32xf32>
    %184 = vector.multi_reduction <maximumf>, %183, %cst_32 [1] : vector<32x16xf32> to vector<32xf32>
    %185 = vector.shape_cast %184 : vector<32xf32> to vector<32x1xf32>
    %186 = vector.broadcast %185 : vector<32x1xf32> to vector<32x16xf32>
    %187 = arith.subf %183, %186 : vector<32x16xf32>
    %188 = math.exp %187 : vector<32x16xf32>
    %cst_33 = arith.constant dense<0.000000e+00> : vector<32xf32>
    %189 = vector.multi_reduction <add>, %188, %cst_33 [1] : vector<32x16xf32> to vector<32xf32>
    %190 = vector.shape_cast %189 : vector<32xf32> to vector<32x1xf32>
    %191 = arith.truncf %188 : vector<32x16xf32> to vector<32x16xbf16>
    %cst_34 = arith.constant dense<0.000000e+00> : vector<32x16xf32>
    %192 = tpu.matmul %191, %176, %cst_34 {dimension_numbers = #tpu.dot_dimension_numbers<[1], [0], [0], [1], [0, 0, 1, 1], [], []>} : vector<32x16xbf16>, vector<16x16xbf16>, vector<32x16xf32> -> vector<32x16xf32>
    %193 = tpu.reciprocal %190 {approx = true} : vector<32x1xf32> -> vector<32x1xf32>
    %194 = vector.broadcast %193 : vector<32x1xf32> to vector<32x16xf32>
    %195 = arith.mulf %192, %194 : vector<32x16xf32>
    %196 = vector.extract_strided_slice %195 {offsets = [0, 0], sizes = [16, 16], strides = [1, 1]} : vector<32x16xf32> to vector<16x16xf32>
    %197 = vector.extract_strided_slice %195 {offsets = [16, 0], sizes = [16, 16], strides = [1, 1]} : vector<32x16xf32> to vector<16x16xf32>
    %198 = tpu.concatenate %118, %119, %144, %145 in 1 : vector<16x16xf32>, vector<16x16xf32>, vector<16x16xf32>, vector<16x16xf32> -> vector<16x64xf32>
    %199 = tpu.concatenate %170, %171, %196, %197 in 1 : vector<16x16xf32>, vector<16x16xf32>, vector<16x16xf32>, vector<16x16xf32> -> vector<16x64xf32>
    %200 = tpu.concatenate %198, %199 in 0 : vector<16x64xf32>, vector<16x64xf32> -> vector<32x64xf32>
    %201 = arith.truncf %200 : vector<32x64xf32> to vector<32x64xbf16>
    %c0_35 = arith.constant 0 : index
    %c0_36 = arith.constant 0 : index
    %202 = vector.load %arg5[%c0_35, %c0_36] : memref<64x32xbf16, #tpu.memory_space<vmem>>, vector<64x32xbf16>
    %cst_37 = arith.constant dense<0.000000e+00> : vector<32x32xf32>
    %203 = tpu.matmul %201, %202, %cst_37 {dimension_numbers = #tpu.dot_dimension_numbers<[1], [0], [0], [1], [0, 0, 1, 1], [], []>} : vector<32x64xbf16>, vector<64x32xbf16>, vector<32x32xf32> -> vector<32x32xf32>
    %204 = arith.addf %0, %203 : vector<32x32xf32>
    %c0_38 = arith.constant 0 : index
    %c0_39 = arith.constant 0 : index
    %205 = vector.load %arg3[%c0_38, %c0_39] : memref<1x32xf32, #tpu.memory_space<vmem>>, vector<1x32xf32>
    %206 = vector.extract_strided_slice %204 {offsets = [0, 0], sizes = [32, 16], strides = [1, 1]} : vector<32x32xf32> to vector<32x16xf32>
    %207 = arith.mulf %206, %206 : vector<32x16xf32>
    %cst_40 = arith.constant dense<0.000000e+00> : vector<32xf32>
    %208 = vector.multi_reduction <add>, %207, %cst_40 [1] : vector<32x16xf32> to vector<32xf32>
    %209 = vector.shape_cast %208 : vector<32xf32> to vector<32x1xf32>
    %cst_41 = arith.constant 1.600000e+01 : f32
    %210 = vector.broadcast %cst_41 : f32 to vector<32x1xf32>
    %211 = arith.divf %209, %210 : vector<32x1xf32>
    %cst_42 = arith.constant 9.99999974E-6 : f32
    %212 = vector.broadcast %cst_42 : f32 to vector<32x1xf32>
    %213 = arith.addf %211, %212 : vector<32x1xf32>
    %214 = math.rsqrt %213 : vector<32x1xf32>
    %215 = vector.broadcast %214 : vector<32x1xf32> to vector<32x16xf32>
    %216 = arith.mulf %206, %215 : vector<32x16xf32>
    %217 = vector.extract_strided_slice %204 {offsets = [0, 16], sizes = [32, 16], strides = [1, 1]} : vector<32x32xf32> to vector<32x16xf32>
    %218 = arith.mulf %217, %217 : vector<32x16xf32>
    %cst_43 = arith.constant dense<0.000000e+00> : vector<32xf32>
    %219 = vector.multi_reduction <add>, %218, %cst_43 [1] : vector<32x16xf32> to vector<32xf32>
    %220 = vector.shape_cast %219 : vector<32xf32> to vector<32x1xf32>
    %cst_44 = arith.constant 1.600000e+01 : f32
    %221 = vector.broadcast %cst_44 : f32 to vector<32x1xf32>
    %222 = arith.divf %220, %221 : vector<32x1xf32>
    %cst_45 = arith.constant 9.99999974E-6 : f32
    %223 = vector.broadcast %cst_45 : f32 to vector<32x1xf32>
    %224 = arith.addf %222, %223 : vector<32x1xf32>
    %225 = math.rsqrt %224 : vector<32x1xf32>
    %226 = vector.broadcast %225 : vector<32x1xf32> to vector<32x16xf32>
    %227 = arith.mulf %217, %226 : vector<32x16xf32>
    %228 = tpu.concatenate %216, %227 in 1 : vector<32x16xf32>, vector<32x16xf32> -> vector<32x32xf32>
    %229 = vector.broadcast %205 : vector<1x32xf32> to vector<32x32xf32>
    %230 = arith.mulf %228, %229 : vector<32x32xf32>
    %231 = arith.truncf %230 : vector<32x32xf32> to vector<32x32xbf16>
    %c0_46 = arith.constant 0 : index
    %c0_47 = arith.constant 0 : index
    %232 = vector.load %arg6[%c0_46, %c0_47] : memref<32x64xbf16, #tpu.memory_space<vmem>>, vector<32x64xbf16>
    %cst_48 = arith.constant dense<0.000000e+00> : vector<32x64xf32>
    %233 = tpu.matmul %231, %232, %cst_48 {dimension_numbers = #tpu.dot_dimension_numbers<[1], [0], [0], [1], [0, 0, 1, 1], [], []>} : vector<32x32xbf16>, vector<32x64xbf16>, vector<32x64xf32> -> vector<32x64xf32>
    %c0_49 = arith.constant 0 : index
    %c0_50 = arith.constant 0 : index
    %234 = vector.load %arg7[%c0_49, %c0_50] : memref<32x64xbf16, #tpu.memory_space<vmem>>, vector<32x64xbf16>
    %cst_51 = arith.constant dense<0.000000e+00> : vector<32x64xf32>
    %235 = tpu.matmul %231, %234, %cst_51 {dimension_numbers = #tpu.dot_dimension_numbers<[1], [0], [0], [1], [0, 0, 1, 1], [], []>} : vector<32x32xbf16>, vector<32x64xbf16>, vector<32x64xf32> -> vector<32x64xf32>
    %236 = arith.negf %233 : vector<32x64xf32>
    %237 = math.exp %236 : vector<32x64xf32>
    %cst_52 = arith.constant 1.000000e+00 : f32
    %238 = vector.broadcast %cst_52 : f32 to vector<32x64xf32>
    %239 = arith.addf %238, %237 : vector<32x64xf32>
    %240 = arith.divf %238, %239 : vector<32x64xf32>
    %241 = arith.mulf %233, %240 : vector<32x64xf32>
    %242 = arith.mulf %241, %235 : vector<32x64xf32>
    %243 = arith.truncf %242 : vector<32x64xf32> to vector<32x64xbf16>
    %c0_53 = arith.constant 0 : index
    %c0_54 = arith.constant 0 : index
    %244 = vector.load %arg8[%c0_53, %c0_54] : memref<64x32xbf16, #tpu.memory_space<vmem>>, vector<64x32xbf16>
    %cst_55 = arith.constant dense<0.000000e+00> : vector<32x32xf32>
    %245 = tpu.matmul %243, %244, %cst_55 {dimension_numbers = #tpu.dot_dimension_numbers<[1], [0], [0], [1], [0, 0, 1, 1], [], []>} : vector<32x64xbf16>, vector<64x32xbf16>, vector<32x32xf32> -> vector<32x32xf32>
    %246 = arith.addf %204, %245 : vector<32x32xf32>
    %c0_56 = arith.constant 0 : index
    %c0_57 = arith.constant 0 : index
    %247 = vector.load %arg11[%c0_56, %c0_57] : memref<32x32xf32, #tpu.memory_space<vmem>>, vector<32x32xf32>
    tpu.vector_store %arg11[%c0_56, %c0_57], %246 {strides = array<i32>} : memref<32x32xf32, #tpu.memory_space<vmem>>, vector<32x32xf32>,
    return
  }
  func.func @transform_0(%arg0: i32) -> (i32, i32) {
    %c0_i32 = arith.constant 0 : i32
    %c0_i32_0 = arith.constant 0 : i32
    %c0_i32_1 = arith.constant 0 : i32
    return %c0_i32, %c0_i32_0 : i32, i32
  }
  func.func @transform_1(%arg0: i32) -> (i32, i32) {
    %c0_i32 = arith.constant 0 : i32
    %c0_i32_0 = arith.constant 0 : i32
    %c0_i32_1 = arith.constant 0 : i32
    return %c0_i32, %c0_i32_0 : i32, i32
  }
  func.func @transform_2(%arg0: i32) -> (i32, i32) {
    %c0_i32 = arith.constant 0 : i32
    %c0_i32_0 = arith.constant 0 : i32
    %c0_i32_1 = arith.constant 0 : i32
    return %c0_i32, %c0_i32_0 : i32, i32
  }
  func.func @transform_3(%arg0: i32) -> (i32, i32) {
    %c0_i32 = arith.constant 0 : i32
    %c0_i32_0 = arith.constant 0 : i32
    %c0_i32_1 = arith.constant 0 : i32
    return %c0_i32, %c0_i32_0 : i32, i32
  }
  func.func @transform_4(%arg0: i32) -> (i32, i32) {
    %c0_i32 = arith.constant 0 : i32
    %c0_i32_0 = arith.constant 0 : i32
    %c0_i32_1 = arith.constant 0 : i32
    return %c0_i32, %c0_i32_0 : i32, i32
  }
  func.func @transform_5(%arg0: i32) -> (i32, i32) {
    %c0_i32 = arith.constant 0 : i32
    %c0_i32_0 = arith.constant 0 : i32
    %c0_i32_1 = arith.constant 0 : i32
    return %c0_i32, %c0_i32_0 : i32, i32
  }
  func.func @transform_6(%arg0: i32) -> (i32, i32) {
    %c0_i32 = arith.constant 0 : i32
    %c0_i32_0 = arith.constant 0 : i32
    %c0_i32_1 = arith.constant 0 : i32
    return %c0_i32, %c0_i32_0 : i32, i32
  }
  func.func @transform_7(%arg0: i32) -> (i32, i32) {
    %c0_i32 = arith.constant 0 : i32
    %c0_i32_0 = arith.constant 0 : i32
    %c0_i32_1 = arith.constant 0 : i32
    return %c0_i32, %c0_i32_0 : i32, i32
  }
  func.func @transform_8(%arg0: i32) -> (i32, i32) {
    %c0_i32 = arith.constant 0 : i32
    %c0_i32_0 = arith.constant 0 : i32
    %c0_i32_1 = arith.constant 0 : i32
    return %c0_i32, %c0_i32_0 : i32, i32
  }
  func.func @transform_9(%arg0: i32) -> (i32, i32) {
    %c0_i32 = arith.constant 0 : i32
    %c0_i32_0 = arith.constant 0 : i32
    %c0_i32_1 = arith.constant 0 : i32
    return %c0_i32, %c0_i32_0 : i32, i32
  }
  func.func @transform_10(%arg0: i32) -> (i32, i32) {
    %c0_i32 = arith.constant 0 : i32
    %c0_i32_0 = arith.constant 0 : i32
    %c0_i32_1 = arith.constant 0 : i32
    return %c0_i32, %c0_i32_0 : i32, i32
  }
}

</mosaic_0001>

<bundles_post_ra>
// kernel: decoder_layer_pallas.1
= control target key start
LH: loop header
LB: loop body
LE: loop exit
PB: predicated region body
PF: predicated region fallthrough
CT: control target
= control target key end

     0   :  { %s2825_s21 = smov 112   ;;  %s3744_s0 = inlined_call_operand.vmem [shape: f32[32,32], index: 0, kind: input, shape index: {}]   ;;  %s3745_s1 = inlined_call_operand.vmem [shape: f32[1,32], index: 1, kind: input, shape index: {}]   ;;  %s3746_s2 = inlined_call_operand.vmem [shape: f32[1,32], index: 2, kind: input, shape index: {}]   ;;  %s3747_s3 = inlined_call_operand.vmem [shape: bf16[32,128], index: 3, kind: input, shape index: {}]   ;;  %s3748_s4 = inlined_call_operand.vmem [shape: bf16[64,32], index: 4, kind: input, shape index: {}]   ;;  %s3749_s5 = inlined_call_operand.vmem [shape: bf16[32,64], index: 5, kind: input, shape index: {}]   ;;  %s3750_s6 = inlined_call_operand.vmem [shape: bf16[32,64], index: 6, kind: input, shape index: {}]   ;;  %s3751_s7 = inlined_call_operand.vmem [shape: bf16[64,32], index: 7, kind: input, shape index: {}]   ;;  %s3752_s8 = inlined_call_operand.vmem [shape: f32[32,8], index: 8, kind: input, shape index: {}]   ;;  %s3753_s9 = inlined_call_operand.vmem [shape: f32[32,8], index: 9, kind: input, shape index: {}]   ;;  %s3754_s10 = inlined_call_operand.hbm [shape: f32[32,32], index: 10, kind: output, shape index: {}]  }
   0x1   :  { %v2899_v0 = vld [vmem:[%s3744_s0] sm:$0xff]  ;;  %v2904_v1 = vld [vmem:[%s3744_s0 + $0x10] sm:$0xff]  ;;  %v2909_v2 = vld [vmem:[%s3744_s0 + $0x8] sm:$0xff] }
   0x2   :  { %v50_v3 = vmul.f32 %v2899_v0, %v2899_v0  ;;  %v52_v4 = vmul.f32 %v2904_v1, %v2904_v1  ;;  %v2918_v5 = vld [vmem:[%s3744_s0 + $0x18] sm:$0xff]  ;;  %v51_v6 = vmul.f32 %v2909_v2, %v2909_v2 }
   0x3   :  { %v53_v7 = vmul.f32 %v2918_v5, %v2918_v5 }
   0x4   :  { %88 = vrot.lane.b32.xlu0 %v50_v3, %s2825_s21  ;;  %92 = vrot.lane.b32.xlu1 %v52_v4, %s2825_s21 }
   0x8   :  { %90 = vrot.lane.b32.xlu0 %v51_v6, %s2825_s21  ;;  %94 = vrot.lane.b32.xlu1 %v53_v7, %s2825_s21 }
   0x9   :  { %15 = vsyncpa [#allocation3], 0  ;;  %vm54_vm0 = vcmask 130048   ;;  %v2671_v20 = vld [vmem:[%s3747_s3] sm:$0xff]   ;;  %v2672_v21 = vld [vmem:[%s3747_s3 + $0x8] sm:$0xff]   ;;  %s2826_s28 = smov 72  }
   0xa   :  { %v55_v8 = vsel %vm54_vm0, %v50_v3, 0.0  ;;  %v64_v9 = vsel %vm54_vm0, %v53_v7, 0.0  ;;  %v58_v10 = vsel %vm54_vm0, %v51_v6, 0.0  ;;  %v61_v11 = vsel %vm54_vm0, %v52_v4, 0.0  ;;  %2428 = vmatprep.subr.bf16.mxu0 %v2671_v20  ;;  %v2945_v22 = vld [vmem:[%s3753_s9] sm:$0xff]  ;;  %s2827_s29 = smov 64  }
   0xb   :  { %2429 = vmatpush3.bf16.msra.mxu0 %v2671_v20  ;;  %v2954_v23 = vld [vmem:[%s3753_s9 + $0x8] sm:$0xff]  ;;  %s2828_s3 = smov 24   ;;  %s2829_s12 = smov 16   ;;  %v2967_v24 = vld [vmem:[%s3752_s8] sm:$0xff]  ;;  %vm160_vm1 = vcmask 261120   ;;  %vm304_vm2 = vcmask 64512  }
   0xc   :  { %2430 = vmatprep.subr.bf16.mxu0 %v2672_v21  ;;  %v2976_v25 = vld [vmem:[%s3752_s8 + $0x8] sm:$0xff]  ;;  %v2334_v61 = vld [vmem:[%s3745_s1] ss:$0 sm:$0xff]  ;;  %s2830_s1 = smov 120   ;;  %s2831_s19 = smov 8   ;;  %vm1833_vm3 = vcmask 392192  }
   0xd   :  { %s2832_s20 = smov 88   ;;  %s2833_s24 = smov 80   ;;  %vm1900_vm4 = vcmask 523264  }
   0xe   :  { %s2834_s27 = smov 40   ;;  %s2836_s30 = smov 56  }
   0xf   :  { %2431 = vmatpush3.bf16.msra.mxu0 %v2672_v21  ;;  %s2837_s11 = smov 48  }
  0x27   :  { %56 = vadd.xlane.f32.xlu0 %v55_v8 }
  0x2b   :  { %65 = vadd.xlane.f32.xlu0 %v64_v9 }
  0x2c   :  { %59 = vadd.xlane.f32.xlu1 %v58_v10 }
  0x30   :  { %62 = vadd.xlane.f32.xlu1 %v61_v11 }
  0x76   :  { %v89_v12 = vpop.permute.xlu0 %88  ;;  %v93_v13 = vpop.permute.xlu1 %92 }
  0x77   :  { %v100_v14 = vsel %vm54_vm0, %v89_v12, 0.0  ;;  %v106_v15 = vsel %vm54_vm0, %v93_v13, 0.0 }
  0x78   :  { %101 = vadd.xlane.f32.xlu0 %v100_v14  ;;  %107 = vadd.xlane.f32.xlu1 %v106_v15 }
  0x7a   :  { %v91_v16 = vpop.permute.xlu0 %90  ;;  %v95_v17 = vpop.permute.xlu1 %94 }
  0x7b   :  { %v103_v18 = vsel %vm54_vm0, %v91_v16, 0.0  ;;  %v109_v19 = vsel %vm54_vm0, %v95_v17, 0.0 }
  0x7c   :  { %104 = vadd.xlane.f32.xlu0 %v103_v18 }
  0x80   :  { %110 = vadd.xlane.f32.xlu0 %v109_v19 }
  0x89   :  { %745 = vrot.lane.b32.xlu1 %v2945_v22, %s2826_s28 }
  0x8d   :  { %747 = vrot.lane.b32.xlu1 %v2954_v23, %s2826_s28 }
  0x91   :  { %799 = vrot.lane.b32.xlu1 %v2954_v23, %s2827_s29 }
  0x95   :  { %327 = vrot.lane.b32.xlu1 %v2954_v23, %s2828_s3 }
  0x96   :  { %797 = vrot.lane.b32.xlu0 %v2945_v22, %s2827_s29 }
  0x99   :  { %379 = vrot.lane.b32.xlu1 %v2954_v23, %s2829_s12 }
  0x9a   :  { %325 = vrot.lane.b32.xlu0 %v2945_v22, %s2828_s3 }
  0x9d   :  { %781 = vrot.lane.b32.xlu1 %v2967_v24, %s2826_s28 }
  0x9e   :  { %377 = vrot.lane.b32.xlu0 %v2945_v22, %s2829_s12 }
  0xa2   :  { %729 = vrot.lane.b32.xlu0 %v2967_v24, %s2827_s29 }
  0xa6   :  { %731 = vrot.lane.b32.xlu0 %v2976_v25, %s2827_s29 }
  0xaa   :  { %783 = vrot.lane.b32.xlu0 %v2976_v25, %s2826_s28 }
  0xb4   :  { %v57_v26 = vpop.xlane.xlu0 %56 }
  0xb5   :  { %v68_v30 = vmul.f32 0.0625, %v57_v26 }
  0xb7   :  { %v72_v33 = vadd.f32 1e-05, %v68_v30 }
  0xb8   :  { %v66_v28 = vpop.xlane.xlu0 %65 }
  0xb9   :  { %v60_v27 = vpop.xlane.xlu1 %59  ;;  %2685 = vrsqrt.f32 %v72_v33  ;;  %v71_v40 = vmul.f32 0.0625, %v66_v28 }
  0xba   :  { %v69_v31 = vmul.f32 0.0625, %v60_v27 }
  0xbb   :  { %v75_v45 = vadd.f32 1e-05, %v71_v40 }
  0xbc   :  { %v73_v34 = vadd.f32 1e-05, %v69_v31 }
  0xbd   :  { %v63_v29 = vpop.xlane.xlu1 %62 }
  0xbe   :  { %v70_v32 = vmul.f32 0.0625, %v63_v29  ;;  %2687 = vrsqrt.f32 %v73_v34 }
  0xc0   :  { %v74_v39 = vadd.f32 1e-05, %v70_v32 }
  0xc3   :  { %v2686_v50 = vpop.eup %2685 }
  0xc4   :  { %v80_v56 = vmul.f32 %v2686_v50, %v2899_v0 }
  0xc8   :  { %v2688_v51 = vpop.eup %2687 }
  0xc9   :  { %v81_v58 = vmul.f32 %v2688_v51, %v2909_v2 }
 0x105   :  { %v102_v35 = vpop.xlane.xlu0 %101  ;;  %v108_v36 = vpop.xlane.xlu1 %107 }
 0x106   :  { %v112_v37 = vmul.f32 0.0625, %v102_v35  ;;  %v114_v38 = vmul.f32 0.0625, %v108_v36 }
 0x108   :  { %v116_v41 = vadd.f32 1e-05, %v112_v37  ;;  %v118_v42 = vadd.f32 1e-05, %v114_v38 }
 0x109   :  { %v105_v43 = vpop.xlane.xlu0 %104  ;;  %v746_v14 = vpop.permute.xlu1 %745 }
 0x10a   :  { %2689 = vrsqrt.f32 %v116_v41  ;;  %v113_v44 = vmul.f32 0.0625, %v105_v43 }
 0x10b   :  { %2691 = vrsqrt.f32 %v74_v39 }
 0x10c   :  { %2693 = vrsqrt.f32 %v118_v42  ;;  %v117_v46 = vadd.f32 1e-05, %v113_v44 }
 0x10d   :  { %v111_v47 = vpop.xlane.xlu0 %110  ;;  %v748_v18 = vpop.permute.xlu1 %747 }
 0x10e   :  { %2695 = vrsqrt.f32 %v117_v46  ;;  %v115_v48 = vmul.f32 0.0625, %v111_v47 }
 0x10f   :  { %2697 = vrsqrt.f32 %v75_v45 }
 0x110   :  { %v119_v49 = vadd.f32 1e-05, %v115_v48 }
 0x111   :  { %v798_v21 = vpop.permute.xlu0 %797  ;;  %v800_v29 = vpop.permute.xlu1 %799 }
 0x112   :  { %2699 = vrsqrt.f32 %v119_v49 }
 0x114   :  { %v2690_v52 = vpop.eup %2689 }
 0x115   :  { %v2692_v53 = vpop.eup %2691  ;;  %v124_v54 = vmul.f32 %v2690_v52, %v2899_v0  ;;  %v326_v31 = vpop.permute.xlu0 %325 }
 0x116   :  { %v2694_v55 = vpop.eup %2693  ;;  %v82_v59 = vmul.f32 %v2692_v53, %v2904_v1  ;;  %v328_v34 = vpop.permute.xlu1 %327 }
 0x117   :  { %v126_v60 = vmul.f32 %v2694_v55, %v2904_v1  ;;  %v128_v63 = vsel %vm54_vm0, %v80_v56, %v124_v54 }
 0x118   :  { %v2696_v57 = vpop.eup %2695  ;;  %v138_v0 = vmul.f32 %v2334_v61, %v128_v63 }
 0x119   :  { %v125_v62 = vmul.f32 %v2696_v57, %v2909_v2  ;;  %v2698_v3 = vpop.eup %2697  ;;  %v130_v1 = vsel %vm54_vm0, %v82_v59, %v126_v60  ;;  %v378_v33 = vpop.permute.xlu0 %377 }
 0x11a   :  { %v83_v8 = vmul.f32 %v2698_v3, %v2918_v5  ;;  %v140_v2 = vmul.f32 %v2334_v61, %v130_v1  ;;  %v380_v37 = vpop.permute.xlu1 %379 }
 0x11b   :  { %v129_v4 = vsel %vm54_vm0, %v81_v58, %v125_v62 }
 0x11c   :  { %v2700_v6 = vpop.eup %2699  ;;  %v139_v7 = vmul.f32 %v2334_v61, %v129_v4 }
 0x11d   :  { %v127_v9 = vmul.f32 %v2700_v6, %v2918_v5  ;;  %v730_v39 = vpop.permute.xlu0 %729 }
 0x11e   :  { %v142_v10 = vpack.c.bf16 %v139_v7, %v138_v0  ;;  %v782_v41 = vpop.permute.xlu1 %781 }
 0x11f   :  { %v131_v11 = vsel %vm54_vm0, %v83_v8, %v127_v9 }
 0x120   :  { %2432 = vmatprep.mubr.msk.bf16.mxu0 %vm160_vm1, %v142_v10  ;;  %v141_v12 = vmul.f32 %v2334_v61, %v131_v11 }
 0x121   :  { %v732_v40 = vpop.permute.xlu0 %731 }
 0x122   :  { %v143_v13 = vpack.c.bf16 %v141_v12, %v140_v2 }
 0x124   :  { %2433 = vmatmul.mubr.msk.bf16.vlgmr.msra.gmra.mrb[0].mxu0 %vm160_vm1, %v143_v13 }
 0x125   :  { %v784_v42 = vpop.permute.xlu0 %783 }
 0x1f7   :  { %v3003_v15 = vpop.f32.mrb[0].mxu0 }
 0x1f8   :  { %v3005_v16 = vpop.f32.mrb[1].mxu0 }
 0x1f9   :  { %v3007_v17 = vpop.f32.mrb[2].mxu0  ;;  %v757_v5 = vmul.f32 %v746_v14, %v3005_v16  ;;  %v809_v26 = vmul.f32 %v798_v21, %v3005_v16  ;;  %v337_v32 = vmul.f32 %v326_v31, %v3005_v16  ;;  %v389_v35 = vmul.f32 %v378_v33, %v3005_v16  ;;  %v3077_v21 = vld [vmem:[%s3753_s9 + $0x10] sm:$0xff] }
 0x1fa   :  { %v3010_v19 = vpop.f32.mrb[3].mxu0  ;;  %v3022_v28 = vpack.c.bf16 %v3007_v17, %v3003_v15  ;;  %v741_v45 = vmul.f32 %v730_v39, %v3005_v16  ;;  %v793_v46 = vmul.f32 %v782_v41, %v3005_v16  ;;  %v280_v3 = vmul.f32 %v3005_v16, %v2945_v22 }
 0x1fb   :  { %765 = vrot.lane.b32.xlu1 %v757_v5, %s2830_s1  ;;  %v758_v20 = vmul.f32 %v748_v18, %v3010_v19  ;;  %v3018_v27 = vpack.c.bf16 %v3010_v19, %v3005_v16  ;;  %v810_v30 = vmul.f32 %v800_v29, %v3010_v19  ;;  %v338_v36 = vmul.f32 %v328_v34, %v3010_v19 }
 0x1fc   :  { %v390_v38 = vmul.f32 %v380_v37, %v3010_v19  ;;  %v794_v51 = vmul.f32 %v784_v42, %v3010_v19  ;;  %v742_v52 = vmul.f32 %v732_v40, %v3010_v19  ;;  %v281_v8 = vmul.f32 %v3010_v19, %v2954_v23 }
 0x1fd   :  { %767 = vrot.lane.b32.xlu0 %v758_v20, %s2830_s1  ;;  %v216_v42 = vmul.f32 %v3005_v16, %v2967_v24 }
 0x1ff   :  { %817 = vrot.lane.b32.xlu1 %v809_v26, %s2831_s19  ;;  %v3097_v26 = vld [vmem:[%s3753_s9 + $0x18] sm:$0xff]  ;;  %s2835_s9 = smov 32  }
 0x201   :  { %224 = vrot.lane.b32.xlu0 %v2945_v22, %s2831_s19 }
 0x203   :  { %819 = vrot.lane.b32.xlu1 %v810_v30, %s2831_s19 }
 0x205   :  { %309 = vrot.lane.b32.xlu0 %v2967_v24, %s2829_s12 }
 0x207   :  { %226 = vrot.lane.b32.xlu1 %v2954_v23, %s2831_s19 }
 0x209   :  { %361 = vrot.lane.b32.xlu0 %v2967_v24, %s2828_s3 }
 0x20b   :  { %311 = vrot.lane.b32.xlu1 %v2976_v25, %s2829_s12 }
 0x20d   :  { %345 = vrot.lane.b32.xlu0 %v337_v32, %s2830_s1 }
 0x20f   :  { %363 = vrot.lane.b32.xlu1 %v2976_v25, %s2828_s3 }
 0x211   :  { %397 = vrot.lane.b32.xlu0 %v389_v35, %s2831_s19 }
 0x213   :  { %347 = vrot.lane.b32.xlu1 %v338_v36, %s2830_s1 }
 0x217   :  { %399 = vrot.lane.b32.xlu1 %v390_v38, %s2831_s19 }
 0x26d   :  { %v766_v43 = vpop.permute.xlu1 %765 }
 0x26e   :  { %v777_v48 = vsub.f32 %v741_v45, %v766_v43  ;;  %v217_v43 = vmul.f32 %v3010_v19, %v2976_v25 }
 0x26f   :  { %v768_v44 = vpop.permute.xlu0 %767 }
 0x270   :  { %v778_v55 = vsub.f32 %v742_v52, %v768_v44 }
 0x271   :  { %v818_v47 = vpop.permute.xlu1 %817 }
 0x272   :  { %v829_v49 = vadd.f32 %v818_v47, %v793_v46 }
 0x273   :  { %v225_v50 = vpop.permute.xlu0 %224 }
 0x274   :  { %v2541_v53 = vpack.i.bf16 %v829_v49, %v777_v48  ;;  %v236_v61 = vmul.f32 %v225_v50, %v3005_v16 }
 0x275   :  { %v820_v54 = vpop.permute.xlu1 %819 }
 0x276   :  { %v830_v56 = vadd.f32 %v820_v54, %v794_v51  ;;  %2542 = vrot.lane.b32.xlu0 %v2541_v53, %s2827_s29 }
 0x277   :  { %v310_v57 = vpop.permute.xlu0 %309 }
 0x278   :  { %v2546_v58 = vpack.i.bf16 %v830_v56, %v778_v55  ;;  %v321_v0 = vmul.f32 %v310_v57, %v3005_v16 }
 0x279   :  { %v227_v59 = vpop.permute.xlu1 %226 }
 0x27a   :  { %264 = vrot.lane.b32.xlu0 %v2967_v24, %s2831_s19  ;;  %2547 = vrot.lane.b32.xlu1 %v2546_v58, %s2827_s29  ;;  %v237_v63 = vmul.f32 %v227_v59, %v3010_v19 }
 0x27b   :  { %v362_v60 = vpop.permute.xlu0 %361 }
 0x27c   :  { %v373_v2 = vmul.f32 %v362_v60, %v3005_v16  ;;  %v3161_v60 = vld [vmem:[%s3752_s8 + $0x10] sm:$0xff] }
 0x27d   :  { %v312_v62 = vpop.permute.xlu1 %311 }
 0x27e   :  { %266 = vrot.lane.b32.xlu1 %v2976_v25, %s2831_s19  ;;  %244 = vrot.lane.b32.xlu0 %v236_v61, %s2830_s1  ;;  %v322_v7 = vmul.f32 %v312_v62, %v3010_v19 }
 0x27f   :  { %v346_v4 = vpop.permute.xlu0 %345 }
 0x280   :  { %v357_v1 = vsub.f32 %v321_v0, %v346_v4 }
 0x281   :  { %v364_v6 = vpop.permute.xlu1 %363 }
 0x282   :  { %246 = vrot.lane.b32.xlu1 %v237_v63, %s2830_s1  ;;  %288 = vrot.lane.b32.xlu0 %v280_v3, %s2831_s19  ;;  %v374_v12 = vmul.f32 %v364_v6, %v3010_v19 }
 0x283   :  { %v398_v11 = vpop.permute.xlu0 %397 }
 0x284   :  { %v409_v5 = vadd.f32 %v398_v11, %v373_v2 }
 0x285   :  { %v348_v9 = vpop.permute.xlu1 %347 }
 0x286   :  { %v358_v10 = vsub.f32 %v322_v7, %v348_v9  ;;  %290 = vrot.lane.b32.xlu1 %v281_v8, %s2831_s19 }
 0x288   :  { %v2551_v13 = vpack.i.bf16 %v358_v10, %v357_v1 }
 0x289   :  { %v400_v14 = vpop.permute.xlu1 %399 }
 0x28a   :  { %v410_v18 = vadd.f32 %v400_v14, %v374_v12  ;;  %885 = vrot.lane.b32.xlu1 %v2945_v22, %s2832_s20  ;;  %2552 = vrot.lane.b32.xlu0 %v2551_v13, %s2825_s21 }
 0x28c   :  { %v2556_v20 = vpack.i.bf16 %v410_v18, %v409_v5 }
 0x28e   :  { %937 = vrot.lane.b32.xlu1 %v2945_v22, %s2833_s24  ;;  %941 = vrot.lane.b32.xlu0 %v3077_v21, %s2833_s24 }
 0x292   :  { %887 = vrot.lane.b32.xlu1 %v2954_v23, %s2832_s20  ;;  %329 = vrot.lane.b32.xlu0 %v3077_v21, %s2828_s3 }
 0x296   :  { %939 = vrot.lane.b32.xlu1 %v2954_v23, %s2833_s24 }
 0x29a   :  { %2557 = vrot.lane.b32.xlu1 %v2556_v20, %s2825_s21 }
 0x29e   :  { %749 = vrot.lane.b32.xlu1 %v3077_v21, %s2826_s28 }
 0x2a2   :  { %801 = vrot.lane.b32.xlu1 %v3077_v21, %s2827_s29 }
 0x2a6   :  { %751 = vrot.lane.b32.xlu1 %v3097_v26, %s2826_s28 }
 0x2aa   :  { %803 = vrot.lane.b32.xlu1 %v3097_v26, %s2827_s29 }
 0x2ae   :  { %889 = vrot.lane.b32.xlu1 %v3077_v21, %s2832_s20 }
 0x2b2   :  { %891 = vrot.lane.b32.xlu1 %v3097_v26, %s2832_s20 }
 0x2b6   :  { %943 = vrot.lane.b32.xlu1 %v3097_v26, %s2833_s24 }
 0x2ba   :  { %465 = vrot.lane.b32.xlu1 %v2945_v22, %s2834_s27 }
 0x2be   :  { %467 = vrot.lane.b32.xlu1 %v2954_v23, %s2834_s27 }
 0x2c2   :  { %517 = vrot.lane.b32.xlu1 %v2945_v22, %s2835_s9 }
 0x2c6   :  { %519 = vrot.lane.b32.xlu1 %v2954_v23, %s2835_s9 }
 0x2ca   :  { %605 = vrot.lane.b32.xlu1 %v2945_v22, %s2836_s30 }
 0x2ce   :  { %607 = vrot.lane.b32.xlu1 %v2954_v23, %s2836_s30 }
 0x2d2   :  { %657 = vrot.lane.b32.xlu1 %v2945_v22, %s2837_s11 }
 0x2d6   :  { %659 = vrot.lane.b32.xlu1 %v2954_v23, %s2837_s11 }
 0x2da   :  { %331 = vrot.lane.b32.xlu1 %v3097_v26, %s2828_s3 }
 0x2de   :  { %383 = vrot.lane.b32.xlu1 %v3097_v26, %s2829_s12 }
 0x2e2   :  { %471 = vrot.lane.b32.xlu1 %v3097_v26, %s2834_s27 }
 0x2e6   :  { %523 = vrot.lane.b32.xlu1 %v3097_v26, %s2835_s9 }
 0x2e8   :  { %v2543_v29 = vpop.permute.xlu0 %2542 }
 0x2e9   :  { %v2545_v30 = vunpack.i.h.bf16 %v2543_v29  ;;  %v2544_v31 = vunpack.i.l.bf16 %v2543_v29 }
 0x2ea   :  { %921 = vrot.lane.b32.xlu1 %v2967_v24, %s2832_s20 }
 0x2eb   :  { %v865_v22 = vsel %vm304_vm2, %v2544_v31, %v2545_v30  ;;  %v3212_v31 = vld [vmem:[%s3752_s8 + $0x18] sm:$0xff]  ;;  %s2838_s8 = smov 96  }
 0x2ec   :  { %v2548_v23 = vpop.permute.xlu1 %2547  ;;  %v265_v32 = vpop.permute.xlu0 %264  ;;  %1009 = vxpose.xlu0.b32.start [1/2] (short) (narrow) %v865_v22, 16 }
 0x2ed   :  { %v2550_v33 = vunpack.i.h.bf16 %v2548_v23  ;;  %v2549_v34 = vunpack.i.l.bf16 %v2548_v23  ;;  %v276_v40 = vmul.f32 %v265_v32, %v3005_v16 }
 0x2ee   :  { %611 = vrot.lane.b32.xlu1 %v3097_v26, %s2836_s30 }
 0x2ef   :  { %v866_v35 = vsel %vm304_vm2, %v2549_v34, %v2550_v33 }
 0x2f0   :  { %v267_v36 = vpop.permute.xlu1 %266  ;;  %v245_v37 = vpop.permute.xlu0 %244  ;;  %1010 = vxpose.xlu0.b32.end [2/2] (short) (narrow) %v866_v35, 16 }
 0x2f1   :  { %v277_v41 = vmul.f32 %v267_v36, %v3010_v19  ;;  %v256_v46 = vsub.f32 %v216_v42, %v245_v37 }
 0x2f2   :  { %663 = vrot.lane.b32.xlu1 %v3097_v26, %s2837_s11 }
 0x2f4   :  { %v247_v38 = vpop.permute.xlu1 %246  ;;  %v289_v39 = vpop.permute.xlu0 %288 }
 0x2f5   :  { %v300_v44 = vadd.f32 %v289_v39, %v276_v40  ;;  %v257_v47 = vsub.f32 %v217_v43, %v247_v38 }
 0x2f7   :  { %v305_v49 = vsel %vm304_vm2, %v256_v46, %v300_v44 }
 0x2f8   :  { %v291_v45 = vpop.permute.xlu1 %290 }
 0x2f9   :  { %v301_v48 = vadd.f32 %v291_v45, %v277_v41 }
 0x2fb   :  { %v306_v50 = vsel %vm304_vm2, %v257_v47, %v301_v48 }
 0x2fc   :  { %v886_v51 = vpop.permute.xlu1 %885  ;;  %v1043_v52 = vpack.c.bf16 %v306_v50, %v305_v49  ;;  %v3175_v7 = vpop.permute.xlu0 %2552 }
 0x2fd   :  { %v897_v53 = vmul.f32 %v886_v51, %v3005_v16 }
 0x2fe   :  { %2438 = vmatprep.mubr.msk.bf16.mxu1 %vm54_vm0, %v1043_v52  ;;  %v2554_v52 = vunpack.i.l.bf16 %v3175_v7 }
 0x2ff   :  { %905 = vrot.lane.b32.xlu1 %v897_v53, %s2830_s1 }
 0x300   :  { %v938_v54 = vpop.permute.xlu1 %937  ;;  %v942_v10 = vpop.permute.xlu0 %941 }
 0x301   :  { %v949_v55 = vmul.f32 %v938_v54, %v3005_v16  ;;  %v951_v2 = vmul.f32 %v3003_v15, %v942_v10 }
 0x303   :  { %957 = vrot.lane.b32.xlu1 %v949_v55, %s2831_s19 }
 0x304   :  { %v888_v56 = vpop.permute.xlu1 %887  ;;  %v330_v44 = vpop.permute.xlu0 %329 }
 0x305   :  { %v898_v18 = vmul.f32 %v888_v56, %v3010_v19 }
 0x308   :  { %v940_v57 = vpop.permute.xlu1 %939 }
 0x309   :  { %v950_v58 = vmul.f32 %v940_v57, %v3010_v19 }
 0x30b   :  { %959 = vrot.lane.b32.xlu1 %v950_v58, %s2831_s19 }
 0x30c   :  { %v3156_v59 = vpop.permute.xlu1 %2557 }
 0x30d   :  { %v2560_v48 = vunpack.i.h.bf16 %v3156_v59  ;;  %v2559_v49 = vunpack.i.l.bf16 %v3156_v59 }
 0x30f   :  { %785 = vrot.lane.b32.xlu1 %v3161_v60, %s2826_s28  ;;  %v445_v55 = vsel %vm304_vm2, %v2554_v52, %v2559_v49 }
 0x310   :  { %v750_v61 = vpop.permute.xlu1 %749 }
 0x311   :  { %v759_v62 = vmul.f32 %v3003_v15, %v750_v61 }
 0x313   :  { %769 = vrot.lane.b32.xlu1 %v759_v62, %s2830_s1 }
 0x314   :  { %v802_v63 = vpop.permute.xlu1 %801 }
 0x315   :  { %v811_v3 = vmul.f32 %v3003_v15, %v802_v63 }
 0x317   :  { %821 = vrot.lane.b32.xlu1 %v811_v3, %s2831_s19 }
 0x318   :  { %v752_v4 = vpop.permute.xlu1 %751 }
 0x319   :  { %381 = vrot.lane.b32.xlu0 %v3077_v21, %s2829_s12 }
 0x31c   :  { %v804_v6 = vpop.permute.xlu1 %803 }
 0x31d   :  { %v812_v0 = vmul.f32 %v3007_v17, %v804_v6  ;;  %469 = vrot.lane.b32.xlu0 %v3077_v21, %s2834_s27 }
 0x31f   :  { %823 = vrot.lane.b32.xlu1 %v812_v0, %s2831_s19 }
 0x320   :  { %v890_v8 = vpop.permute.xlu1 %889 }
 0x321   :  { %521 = vrot.lane.b32.xlu0 %v3077_v21, %s2835_s9  ;;  %v899_v1 = vmul.f32 %v3003_v15, %v890_v8  ;;  %v339_v8 = vmul.f32 %v3003_v15, %v330_v44 }
 0x323   :  { %925 = vrot.lane.b32.xlu1 %v3161_v60, %s2832_s20 }
 0x324   :  { %v892_v9 = vpop.permute.xlu1 %891 }
 0x325   :  { %869 = vrot.lane.b32.xlu0 %v2967_v24, %s2833_s24  ;;  %v900_v38 = vmul.f32 %v3007_v17, %v892_v9 }
 0x327   :  { %909 = vrot.lane.b32.xlu1 %v899_v1, %s2830_s1 }
 0x328   :  { %v944_v11 = vpop.permute.xlu1 %943 }
 0x329   :  { %609 = vrot.lane.b32.xlu0 %v3077_v21, %s2836_s30  ;;  %v952_v13 = vmul.f32 %v3007_v17, %v944_v11 }
 0x32b   :  { %961 = vrot.lane.b32.xlu1 %v951_v2, %s2831_s19 }
 0x32c   :  { %v466_v12 = vpop.permute.xlu1 %465 }
 0x32d   :  { %661 = vrot.lane.b32.xlu0 %v3077_v21, %s2837_s11  ;;  %v477_v46 = vmul.f32 %v466_v12, %v3005_v16 }
 0x32f   :  { %963 = vrot.lane.b32.xlu1 %v952_v13, %s2831_s19 }
 0x330   :  { %v468_v14 = vpop.permute.xlu1 %467 }
 0x331   :  { %871 = vrot.lane.b32.xlu0 %v2976_v25, %s2833_s24  ;;  %v478_v22 = vmul.f32 %v468_v14, %v3010_v19 }
 0x333   :  { %451 = vrot.lane.b32.xlu1 %v2976_v25, %s2835_s9 }
 0x334   :  { %v518_v5 = vpop.permute.xlu1 %517 }
 0x335   :  { %923 = vrot.lane.b32.xlu0 %v2976_v25, %s2832_s20  ;;  %v529_v50 = vmul.f32 %v518_v5, %v3005_v16 }
 0x337   :  { %503 = vrot.lane.b32.xlu1 %v2976_v25, %s2834_s27 }
 0x338   :  { %v520_v20 = vpop.permute.xlu1 %519 }
 0x339   :  { %907 = vrot.lane.b32.xlu0 %v898_v18, %s2830_s1  ;;  %v530_v32 = vmul.f32 %v520_v20, %v3010_v19 }
 0x33b   :  { %591 = vrot.lane.b32.xlu1 %v2976_v25, %s2837_s11 }
 0x33c   :  { %v606_v29 = vpop.permute.xlu1 %605 }
 0x33d   :  { %733 = vrot.lane.b32.xlu0 %v3161_v60, %s2827_s29  ;;  %v617_v57 = vmul.f32 %v606_v29, %v3005_v16 }
 0x33f   :  { %643 = vrot.lane.b32.xlu1 %v2976_v25, %s2836_s30  ;;  %v760_v25 = vmul.f32 %v3007_v17, %v752_v4 }
 0x340   :  { %v608_v30 = vpop.permute.xlu1 %607 }
 0x341   :  { %735 = vrot.lane.b32.xlu0 %v3212_v31, %s2827_s29  ;;  %v618_v34 = vmul.f32 %v608_v30, %v3010_v19 }
 0x343   :  { %487 = vrot.lane.b32.xlu1 %v478_v22, %s2830_s1 }
 0x344   :  { %v658_v23 = vpop.permute.xlu1 %657 }
 0x345   :  { %787 = vrot.lane.b32.xlu0 %v3212_v31, %s2826_s28  ;;  %v669_v62 = vmul.f32 %v658_v23, %v3005_v16 }
 0x347   :  { %539 = vrot.lane.b32.xlu1 %v530_v32, %s2831_s19 }
 0x348   :  { %v660_v33 = vpop.permute.xlu1 %659 }
 0x349   :  { %771 = vrot.lane.b32.xlu0 %v760_v25, %s2830_s1  ;;  %v670_v36 = vmul.f32 %v660_v33, %v3010_v19 }
 0x34b   :  { %627 = vrot.lane.b32.xlu1 %v618_v34, %s2830_s1 }
 0x34c   :  { %v332_v35 = vpop.permute.xlu1 %331 }
 0x34d   :  { %873 = vrot.lane.b32.xlu0 %v3161_v60, %s2833_s24  ;;  %v340_v40 = vmul.f32 %v3007_v17, %v332_v35 }
 0x34f   :  { %679 = vrot.lane.b32.xlu1 %v670_v36, %s2831_s19 }
 0x350   :  { %v384_v37 = vpop.permute.xlu1 %383 }
 0x351   :  { %875 = vrot.lane.b32.xlu0 %v3212_v31, %s2833_s24  ;;  %v392_v42 = vmul.f32 %v3007_v17, %v384_v37 }
 0x353   :  { %230 = vrot.lane.b32.xlu1 %v3097_v26, %s2831_s19 }
 0x354   :  { %v472_v39 = vpop.permute.xlu1 %471 }
 0x355   :  { %927 = vrot.lane.b32.xlu0 %v3212_v31, %s2832_s20  ;;  %v480_v59 = vmul.f32 %v3007_v17, %v472_v39 }
 0x357   :  { %315 = vrot.lane.b32.xlu1 %v3212_v31, %s2829_s12 }
 0x358   :  { %v524_v41 = vpop.permute.xlu1 %523 }
 0x359   :  { %911 = vrot.lane.b32.xlu0 %v900_v38, %s2830_s1  ;;  %v532_v63 = vmul.f32 %v3007_v17, %v524_v41 }
 0x35b   :  { %367 = vrot.lane.b32.xlu1 %v3212_v31, %s2828_s3 }
 0x35c   :  { %v3249_v43 = vpop.permute.xlu1 %921 }
 0x35d   :  { %449 = vrot.lane.b32.xlu0 %v2967_v24, %s2835_s9 }
 0x35f   :  { %351 = vrot.lane.b32.xlu1 %v340_v40, %s2830_s1  ;;  %v933_v40 = vmul.f32 %v3249_v43, %v3005_v16 }
 0x360   :  { %v612_v45 = vpop.permute.xlu1 %611 }
 0x361   :  { %501 = vrot.lane.b32.xlu0 %v2967_v24, %s2834_s27  ;;  %v620_v4 = vmul.f32 %v3007_v17, %v612_v45 }
 0x363   :  { %403 = vrot.lane.b32.xlu1 %v392_v42, %s2831_s19 }
 0x364   :  { %v664_v51 = vpop.permute.xlu1 %663 }
 0x365   :  { %589 = vrot.lane.b32.xlu0 %v2967_v24, %s2837_s11  ;;  %v672_v0 = vmul.f32 %v3007_v17, %v664_v51 }
 0x367   :  { %455 = vrot.lane.b32.xlu1 %v3212_v31, %s2835_s9 }
 0x369   :  { %641 = vrot.lane.b32.xlu0 %v2967_v24, %s2836_s30  ;;  %v2555_v24 = vunpack.i.h.bf16 %v3175_v7 }
 0x36b   :  { %507 = vrot.lane.b32.xlu1 %v3212_v31, %s2834_s27  ;;  %v446_v56 = vsel %vm304_vm2, %v2555_v24, %v2560_v48 }
 0x36c   :  { %v1025_v47 = vpop.trf.xlu0  ;;  %v1044_v61 = vpack.c.bf16 %v446_v56, %v445_v55 }
 0x36d   :  { %485 = vrot.lane.b32.xlu0 %v477_v46, %s2830_s1 }
 0x36f   :  { %595 = vrot.lane.b32.xlu1 %v3212_v31, %s2837_s11 }
 0x370   :  { %v1026_v53 = vpop.trf.xlu0 }
 0x371   :  { %537 = vrot.lane.b32.xlu0 %v529_v50, %s2831_s19  ;;  %v1041_v54 = vpack.c.bf16 %v1026_v53, %v1025_v47  ;;  %v3273_v58 = vpop.permute.xlu1 %905 }
 0x373   :  { %647 = vrot.lane.b32.xlu1 %v3212_v31, %s2836_s30  ;;  %2436 = vmatprep.subr.bf16.mxu1 %v1041_v54 }
 0x374   :  { %2437 = vmatpush3.bf16.msra.mxu1 %v1041_v54 }
 0x375   :  { %625 = vrot.lane.b32.xlu0 %v617_v57, %s2830_s1  ;;  %v958_v3 = vpop.permute.xlu1 %957 }
 0x376   :  { %v969_v48 = vadd.f32 %v958_v3, %v933_v40 }
 0x377   :  { %491 = vrot.lane.b32.xlu1 %v480_v59, %s2830_s1  ;;  %2439 = vmatmul.mubr.msk.bf16.vlgmr.msra.gmra.mrb[0].mxu1 %vm54_vm0, %v1044_v61 }
 0x379   :  { %677 = vrot.lane.b32.xlu0 %v669_v62, %s2831_s19 }
 0x37b   :  { %543 = vrot.lane.b32.xlu1 %v532_v63, %s2831_s19 }
 0x37d   :  { %v960_v6 = vpop.permute.xlu1 %959  ;;  %228 = vrot.lane.b32.xlu0 %v3077_v21, %s2831_s19 }
 0x37f   :  { %631 = vrot.lane.b32.xlu1 %v620_v4, %s2830_s1 }
 0x381   :  { %v786_v7 = vpop.permute.xlu1 %785  ;;  %313 = vrot.lane.b32.xlu0 %v3161_v60, %s2829_s12 }
 0x382   :  { %v795_v51 = vmul.f32 %v3003_v15, %v786_v7 }
 0x383   :  { %683 = vrot.lane.b32.xlu1 %v672_v0, %s2831_s19 }
 0x385   :  { %365 = vrot.lane.b32.xlu0 %v3161_v60, %s2828_s3  ;;  %v770_v9 = vpop.permute.xlu1 %769 }
 0x389   :  { %349 = vrot.lane.b32.xlu0 %v339_v8, %s2830_s1  ;;  %v822_v11 = vpop.permute.xlu1 %821 }
 0x38a   :  { %v831_v53 = vadd.f32 %v822_v11, %v795_v51 }
 0x38b   :  { %v382_v1 = vpop.permute.xlu0 %381 }
 0x38c   :  { %v391_v10 = vmul.f32 %v3003_v15, %v382_v1 }
 0x38e   :  { %401 = vrot.lane.b32.xlu0 %v391_v10, %s2831_s19 }
 0x38f   :  { %v470_v2 = vpop.permute.xlu0 %469 }
 0x390   :  { %v479_v22 = vmul.f32 %v3003_v15, %v470_v2 }
 0x391   :  { %v824_v12 = vpop.permute.xlu1 %823 }
 0x392   :  { %453 = vrot.lane.b32.xlu0 %v3161_v60, %s2835_s9 }
 0x393   :  { %v522_v13 = vpop.permute.xlu0 %521 }
 0x394   :  { %v531_v25 = vmul.f32 %v3003_v15, %v522_v13 }
 0x395   :  { %v926_v14 = vpop.permute.xlu1 %925 }
 0x396   :  { %505 = vrot.lane.b32.xlu0 %v3161_v60, %s2834_s27  ;;  %v935_v8 = vmul.f32 %v3003_v15, %v926_v14 }
 0x397   :  { %v870_v5 = vpop.permute.xlu0 %869 }
 0x398   :  { %v881_v35 = vmul.f32 %v870_v5, %v3005_v16 }
 0x399   :  { %v910_v18 = vpop.permute.xlu1 %909 }
 0x39a   :  { %593 = vrot.lane.b32.xlu0 %v3161_v60, %s2837_s11  ;;  %v917_v42 = vsub.f32 %v881_v35, %v3273_v58 }
 0x39b   :  { %v610_v20 = vpop.permute.xlu0 %609 }
 0x39c   :  { %v619_v36 = vmul.f32 %v3003_v15, %v610_v20  ;;  %v2561_v24 = vpack.i.bf16 %v969_v48, %v917_v42 }
 0x39d   :  { %v962_v29 = vpop.permute.xlu1 %961 }
 0x39e   :  { %645 = vrot.lane.b32.xlu0 %v3161_v60, %s2836_s30  ;;  %v971_v10 = vadd.f32 %v962_v29, %v935_v8 }
 0x39f   :  { %v662_v30 = vpop.permute.xlu0 %661 }
 0x3a0   :  { %v671_v44 = vmul.f32 %v3003_v15, %v662_v30 }
 0x3a1   :  { %v964_v23 = vpop.permute.xlu1 %963 }
 0x3a2   :  { %489 = vrot.lane.b32.xlu0 %v479_v22, %s2830_s1 }
 0x3a3   :  { %v872_v32 = vpop.permute.xlu0 %871 }
 0x3a4   :  { %v882_v39 = vmul.f32 %v872_v32, %v3010_v19 }
 0x3a5   :  { %v3310_v33 = vpop.permute.xlu1 %451 }
 0x3a6   :  { %541 = vrot.lane.b32.xlu0 %v531_v25, %s2831_s19 }
 0x3a7   :  { %v924_v34 = vpop.permute.xlu0 %923 }
 0x3a8   :  { %v934_v37 = vmul.f32 %v924_v34, %v3010_v19 }
 0x3a9   :  { %v3316_v38 = vpop.permute.xlu1 %503 }
 0x3aa   :  { %629 = vrot.lane.b32.xlu0 %v619_v36, %s2830_s1  ;;  %v970_v45 = vadd.f32 %v960_v6, %v934_v37 }
 0x3ab   :  { %v908_v41 = vpop.permute.xlu0 %907 }
 0x3ac   :  { %v918_v46 = vsub.f32 %v882_v39, %v908_v41 }
 0x3ad   :  { %v3324_v47 = vpop.permute.xlu1 %591 }
 0x3ae   :  { %v2566_v49 = vpack.i.bf16 %v970_v45, %v918_v46  ;;  %681 = vrot.lane.b32.xlu0 %v671_v44, %s2831_s19  ;;  %v462_v44 = vmul.f32 %v3310_v33, %v3010_v19 }
 0x3af   :  { %v734_v50 = vpop.permute.xlu0 %733 }
 0x3b0   :  { %v743_v52 = vmul.f32 %v3003_v15, %v734_v50  ;;  %2567 = vrot.lane.b32.xlu1 %v2566_v49, %s2837_s11  ;;  %v514_v50 = vmul.f32 %v3316_v38, %v3010_v19 }
 0x3b1   :  { %v3330_v43 = vpop.permute.xlu1 %643 }
 0x3b2   :  { %v779_v54 = vsub.f32 %v743_v52, %v770_v9  ;;  %2562 = vrot.lane.b32.xlu0 %v2561_v24, %s2837_s11 }
 0x3b3   :  { %v736_v55 = vpop.permute.xlu0 %735 }
 0x3b4   :  { %v2571_v56 = vpack.i.bf16 %v831_v53, %v779_v54  ;;  %v744_v62 = vmul.f32 %v3007_v17, %v736_v55  ;;  %v602_v55 = vmul.f32 %v3324_v47, %v3010_v19 }
 0x3b5   :  { %v488_v57 = vpop.permute.xlu1 %487 }
 0x3b6   :  { %2572 = vrot.lane.b32.xlu1 %v2571_v56, %s2827_s29  ;;  %v498_v46 = vsub.f32 %v462_v44, %v488_v57 }
 0x3b7   :  { %v788_v58 = vpop.permute.xlu0 %787 }
 0x3b8   :  { %v796_v59 = vmul.f32 %v3007_v17, %v788_v58 }
 0x3b9   :  { %v540_v61 = vpop.permute.xlu1 %539 }
 0x3ba   :  { %v832_v3 = vadd.f32 %v824_v12, %v796_v59  ;;  %v550_v53 = vadd.f32 %v540_v61, %v514_v50  ;;  %v654_v61 = vmul.f32 %v3330_v43, %v3010_v19  ;;  %v282_v19 = vmul.f32 %v3003_v15, %v3077_v21 }
 0x3bb   :  { %v772_v63 = vpop.permute.xlu0 %771 }
 0x3bc   :  { %v780_v4 = vsub.f32 %v744_v62, %v772_v63 }
 0x3bd   :  { %v628_v6 = vpop.permute.xlu1 %627 }
 0x3be   :  { %v2576_v0 = vpack.i.bf16 %v832_v3, %v780_v4  ;;  %v638_v59 = vsub.f32 %v602_v55, %v628_v6 }
 0x3bf   :  { %v874_v7 = vpop.permute.xlu0 %873 }
 0x3c0   :  { %v883_v9 = vmul.f32 %v3003_v15, %v874_v7  ;;  %2577 = vrot.lane.b32.xlu0 %v2576_v0, %s2827_s29 }
 0x3c1   :  { %v680_v1 = vpop.permute.xlu1 %679 }
 0x3c2   :  { %v919_v11 = vsub.f32 %v883_v9, %v910_v18  ;;  %v690_v0 = vadd.f32 %v680_v1, %v654_v61 }
 0x3c3   :  { %v876_v2 = vpop.permute.xlu0 %875 }
 0x3c4   :  { %v2581_v13 = vpack.i.bf16 %v971_v10, %v919_v11  ;;  %1143 = vrot.lane.b32.xlu0 %v3018_v27, %s2835_s9  ;;  %v884_v14 = vmul.f32 %v3007_v17, %v876_v2  ;;  %v283_v11 = vmul.f32 %v3007_v17, %v3097_v26 }
 0x3c5   :  { %v231_v5 = vpop.permute.xlu1 %230 }
 0x3c6   :  { %2582 = vrot.lane.b32.xlu1 %v2581_v13, %s2837_s11 }
 0x3c7   :  { %v928_v12 = vpop.permute.xlu0 %927 }
 0x3c8   :  { %v936_v20 = vmul.f32 %v3007_v17, %v928_v12 }
 0x3c9   :  { %v316_v30 = vpop.permute.xlu1 %315 }
 0x3ca   :  { %v972_v32 = vadd.f32 %v964_v23, %v936_v20  ;;  %v324_v1 = vmul.f32 %v3007_v17, %v316_v30 }
 0x3cb   :  { %v912_v22 = vpop.permute.xlu0 %911 }
 0x3cc   :  { %v920_v25 = vsub.f32 %v884_v14, %v912_v22 }
 0x3cd   :  { %v368_v34 = vpop.permute.xlu1 %367 }
 0x3ce   :  { %v2586_v29 = vpack.i.bf16 %v972_v32, %v920_v25  ;;  %v376_v21 = vmul.f32 %v3007_v17, %v368_v34 }
 0x3cf   :  { %v450_v18 = vpop.permute.xlu0 %449 }
 0x3d0   :  { %2587 = vrot.lane.b32.xlu1 %v2586_v29, %s2837_s11  ;;  %v461_v23 = vmul.f32 %v450_v18, %v3005_v16 }
 0x3d1   :  { %v352_v35 = vpop.permute.xlu1 %351 }
 0x3d2   :  { %v360_v13 = vsub.f32 %v324_v1, %v352_v35 }
 0x3d3   :  { %v502_v36 = vpop.permute.xlu0 %501 }
 0x3d4   :  { %v513_v51 = vmul.f32 %v502_v36, %v3005_v16 }
 0x3d5   :  { %v404_v37 = vpop.permute.xlu1 %403 }
 0x3d6   :  { %v412_v22 = vadd.f32 %v404_v37, %v376_v21 }
 0x3d7   :  { %v590_v39 = vpop.permute.xlu0 %589 }
 0x3d8   :  { %v601_v56 = vmul.f32 %v590_v39, %v3005_v16 }
 0x3d9   :  { %v3345_v40 = vpop.permute.xlu1 %455 }
 0x3da   :  { %v464_v34 = vmul.f32 %v3007_v17, %v3345_v40 }
 0x3db   :  { %v642_v41 = vpop.permute.xlu0 %641 }
 0x3dc   :  { %v653_v63 = vmul.f32 %v642_v41, %v3005_v16  ;;  %v239_v16 = vmul.f32 %v3007_v17, %v231_v5 }
 0x3dd   :  { %v3347_v42 = vpop.permute.xlu1 %507 }
 0x3df   :  { %v486_v45 = vpop.permute.xlu0 %485 }
 0x3e0   :  { %v497_v48 = vsub.f32 %v461_v23, %v486_v45  ;;  %v516_v45 = vmul.f32 %v3007_v17, %v3347_v42 }
 0x3e1   :  { %v3352_v49 = vpop.permute.xlu1 %595 }
 0x3e2   :  { %v2591_v24 = vpack.i.bf16 %v498_v46, %v497_v48  ;;  %v604_v40 = vmul.f32 %v3007_v17, %v3352_v49 }
 0x3e3   :  { %v538_v52 = vpop.permute.xlu0 %537 }
 0x3e4   :  { %v549_v54 = vadd.f32 %v538_v52, %v513_v51  ;;  %2592 = vrot.lane.b32.xlu1 %v2591_v24, %s2838_s8 }
 0x3e5   :  { %v648_v33 = vpop.permute.xlu1 %647 }
 0x3e6   :  { %v2596_v57 = vpack.i.bf16 %v550_v53, %v549_v54  ;;  %v3362_v58 = vmul.f32 %v3007_v17, %v648_v33 }
 0x3e7   :  { %v626_v38 = vpop.permute.xlu0 %625 }
 0x3e8   :  { %v637_v62 = vsub.f32 %v601_v56, %v626_v38  ;;  %2597 = vrot.lane.b32.xlu0 %v2596_v57, %s2838_s8 }
 0x3e9   :  { %v492_v29 = vpop.permute.xlu1 %491 }
 0x3ea   :  { %v2601_v3 = vpack.i.bf16 %v638_v59, %v637_v62  ;;  %v500_v23 = vsub.f32 %v464_v34, %v492_v29 }
 0x3eb   :  { %v678_v4 = vpop.permute.xlu0 %677 }
 0x3ec   :  { %v689_v47 = vadd.f32 %v678_v4, %v653_v63  ;;  %2602 = vrot.lane.b32.xlu1 %v2601_v3, %s2833_s24 }
 0x3ed   :  { %v544_v39 = vpop.permute.xlu1 %543 }
 0x3ee   :  { %v2606_v7 = vpack.i.bf16 %v690_v0, %v689_v47  ;;  %v552_v24 = vadd.f32 %v544_v39, %v516_v45 }
 0x3ef   :  { %v229_v8 = vpop.permute.xlu0 %228 }
 0x3f0   :  { %268 = vrot.lane.b32.xlu1 %v3161_v60, %s2831_s19  ;;  %2607 = vrot.lane.b32.xlu0 %v2606_v7, %s2833_s24  ;;  %v238_v6 = vmul.f32 %v3003_v15, %v229_v8 }
 0x3f1   :  { %v632_v50 = vpop.permute.xlu1 %631 }
 0x3f2   :  { %v640_v55 = vsub.f32 %v604_v40, %v632_v50  ;;  %v219_v40 = vmul.f32 %v3007_v17, %v3212_v31 }
 0x3f3   :  { %v314_v9 = vpop.permute.xlu0 %313 }
 0x3f4   :  { %270 = vrot.lane.b32.xlu0 %v3212_v31, %s2831_s19  ;;  %248 = vrot.lane.b32.xlu1 %v238_v6, %s2830_s1  ;;  %v323_v10 = vmul.f32 %v3003_v15, %v314_v9 }
 0x3f5   :  { %v684_v42 = vpop.permute.xlu1 %683 }
 0x3f6   :  { %v692_v59 = vadd.f32 %v684_v42, %v3362_v58 }
 0x3f7   :  { %v366_v43 = vpop.permute.xlu0 %365 }
 0x3f8   :  { %250 = vrot.lane.b32.xlu0 %v239_v16, %s2830_s1  ;;  %292 = vrot.lane.b32.xlu1 %v282_v19, %s2831_s19  ;;  %v375_v20 = vmul.f32 %v3003_v15, %v366_v43 }
 0x3fb   :  { %v350_v2 = vpop.permute.xlu0 %349 }
 0x3fc   :  { %v359_v12 = vsub.f32 %v323_v10, %v350_v2  ;;  %294 = vrot.lane.b32.xlu0 %v283_v11, %s2831_s19 }
 0x3fe   :  { %v2611_v5 = vpack.i.bf16 %v360_v13, %v359_v12 }
 0x400   :  { %2612 = vrot.lane.b32.xlu1 %v2611_v5, %s2825_s21  ;;  %v402_v14 = vpop.permute.xlu0 %401 }
 0x401   :  { %v411_v30 = vadd.f32 %v402_v14, %v375_v20 }
 0x403   :  { %v2616_v32 = vpack.i.bf16 %v412_v22, %v411_v30 }
 0x404   :  { %v454_v25 = vpop.permute.xlu0 %453 }
 0x405   :  { %2617 = vrot.lane.b32.xlu0 %v2616_v32, %s2825_s21  ;;  %v463_v41 = vmul.f32 %v3003_v15, %v454_v25 }
 0x408   :  { %v506_v26 = vpop.permute.xlu0 %505 }
 0x409   :  { %v515_v46 = vmul.f32 %v3003_v15, %v506_v26 }
 0x40c   :  { %v594_v18 = vpop.permute.xlu0 %593 }
 0x40d   :  { %v603_v53 = vmul.f32 %v3003_v15, %v594_v18 }
 0x410   :  { %v646_v35 = vpop.permute.xlu0 %645 }
 0x411   :  { %v655_v36 = vmul.f32 %v3003_v15, %v646_v35 }
 0x414   :  { %v490_v44 = vpop.permute.xlu0 %489 }
 0x415   :  { %v499_v37 = vsub.f32 %v463_v41, %v490_v44 }
 0x417   :  { %v2621_v48 = vpack.i.bf16 %v500_v23, %v499_v37 }
 0x418   :  { %v542_v51 = vpop.permute.xlu0 %541 }
 0x419   :  { %v551_v52 = vadd.f32 %v542_v51, %v515_v46  ;;  %2622 = vrot.lane.b32.xlu1 %v2621_v48, %s2838_s8  ;;  %v218_v51 = vmul.f32 %v3003_v15, %v3161_v60 }
 0x41b   :  { %v2626_v54 = vpack.i.bf16 %v552_v24, %v551_v52 }
 0x41c   :  { %v630_v33 = vpop.permute.xlu0 %629 }
 0x41d   :  { %v639_v56 = vsub.f32 %v603_v53, %v630_v33  ;;  %2627 = vrot.lane.b32.xlu0 %v2626_v54, %s2838_s8 }
 0x41f   :  { %v2631_v57 = vpack.i.bf16 %v640_v55, %v639_v56 }
 0x420   :  { %v682_v38 = vpop.permute.xlu0 %681 }
 0x421   :  { %v691_v62 = vadd.f32 %v682_v38, %v655_v36  ;;  %2632 = vrot.lane.b32.xlu1 %v2631_v57, %s2833_s24 }
 0x422   :  { %v3408_v4 = vpop.permute.xlu1 %2567 }
 0x423   :  { %v2636_v61 = vpack.i.bf16 %v692_v59, %v691_v62  ;;  %v2570_v60 = vunpack.i.h.bf16 %v3408_v4  ;;  %v2569_v59 = vunpack.i.l.bf16 %v3408_v4 }
 0x424   :  { %v3404_v63 = vpop.permute.xlu0 %2562 }
 0x425   :  { %v2565_v38 = vunpack.i.h.bf16 %v3404_v63 }
 0x428   :  { %v3412_v8 = vpop.permute.xlu1 %2572 }
 0x429   :  { %v2575_v31 = vunpack.i.h.bf16 %v3412_v8  ;;  %v2574_v62 = vunpack.i.l.bf16 %v3412_v8 }
 0x432   :  { %v3406_v49 = vpop.permute.xlu0 %2577 }
 0x436   :  { %v1144_v3 = vpop.permute.xlu0 %1143 }
 0x437   :  { %2442 = vmatprep.subr.bf16.mxu1 %v1144_v3 }
 0x438   :  { %2443 = vmatpush3.bf16.msra.mxu1 %v1144_v3  ;;  %v3420_v43 = vpop.permute.xlu1 %2582  ;;  %v2580_v3 = vunpack.i.h.bf16 %v3406_v49 }
 0x439   :  { %v2584_v4 = vunpack.i.l.bf16 %v3420_v43 }
 0x442   :  { %v3428_v2 = vpop.permute.xlu1 %2587 }
 0x443   :  { %v2589_v8 = vunpack.i.l.bf16 %v3428_v2 }
 0x44a   :  { %v2440_v0 = vpop.f32.mrb[0].mxu1 }
 0x44b   :  { %v3410_v47 = vmul.f32 0.25, %v2440_v0  ;;  %v1085_v7 = vpop.f32.mrb[1].mxu1  ;;  %v2579_v0 = vunpack.i.l.bf16 %v3406_v49 }
 0x44c   :  { %v2441_v58 = vpop.f32.mrb[2].mxu1  ;;  %v3414_v6 = vmul.f32 0.25, %v1085_v7  ;;  %v2585_v7 = vunpack.i.h.bf16 %v3420_v43 }
 0x44d   :  { %v1088_v9 = vpop.f32.mrb[3].mxu1  ;;  %v1110_v16 = vsel %vm54_vm0, %v3410_v47, -inf  ;;  %v3424_v10 = vmul.f32 0.25, %v2441_v58  ;;  %v868_v58 = vsel %vm304_vm2, %v2579_v0, %v2580_v3 }
 0x44e   :  { %v3418_v19 = vmul.f32 0.25, %v1088_v9  ;;  %1111 = vmax.xlane.f32.xlu0 %v1110_v16  ;;  %v1104_v11 = vsel %vm54_vm0, %v3414_v6, -inf  ;;  %v2590_v9 = vunpack.i.h.bf16 %v3428_v2  ;;  %v1007_v16 = vsel %vm304_vm2, %v2584_v4, %v2585_v7 }
 0x44f   :  { %v1113_v13 = vsel %vm54_vm0, %v3424_v10, -inf }
 0x450   :  { %v1107_v1 = vsel %vm54_vm0, %v3418_v19, -inf }
 0x451   :  { %1108 = vmax.xlane.f32.xlu1 %v1107_v1  ;;  %v1008_v1 = vsel %vm304_vm2, %v2589_v8, %v2590_v9 }
 0x452   :  { %1105 = vmax.xlane.f32.xlu0 %v1104_v11 }
 0x456   :  { %1114 = vmax.xlane.f32.xlu0 %v1113_v13  ;;  %v2593_v12 = vpop.permute.xlu1 %2592 }
 0x457   :  { %v2595_v21 = vunpack.i.h.bf16 %v2593_v12  ;;  %v2594_v20 = vunpack.i.l.bf16 %v2593_v12 }
 0x45a   :  { %v2598_v5 = vpop.permute.xlu0 %2597 }
 0x45b   :  { %v2600_v14 = vunpack.i.h.bf16 %v2598_v5  ;;  %v2599_v22 = vunpack.i.l.bf16 %v2598_v5 }
 0x45d   :  { %v3433_v30 = vsel %vm304_vm2, %v2595_v21, %v2600_v14  ;;  %v3436_v32 = vsel %vm304_vm2, %v2594_v20, %v2599_v22 }
 0x45e   :  { %v1242_v25 = vpack.c.bf16 %v3433_v30, %v3436_v32  ;;  %v2603_v26 = vpop.permute.xlu1 %2602 }
 0x45f   :  { %v2605_v35 = vunpack.i.h.bf16 %v2603_v26  ;;  %v2604_v36 = vunpack.i.l.bf16 %v2603_v26 }
 0x462   :  { %v269_v29 = vpop.permute.xlu1 %268  ;;  %v2608_v18 = vpop.permute.xlu0 %2607 }
 0x463   :  { %v2610_v39 = vunpack.i.h.bf16 %v2608_v18  ;;  %v2609_v34 = vunpack.i.l.bf16 %v2608_v18  ;;  %v278_v50 = vmul.f32 %v3003_v15, %v269_v29  ;;  %v2564_v15 = vunpack.i.l.bf16 %v3404_v63 }
 0x464   :  { %v867_v63 = vsel %vm304_vm2, %v2574_v62, %v2575_v31 }
 0x465   :  { %v3441_v41 = vsel %vm304_vm2, %v2605_v35, %v2610_v39  ;;  %v3444_v44 = vsel %vm304_vm2, %v2604_v36, %v2609_v34 }
 0x466   :  { %v1243_v23 = vpack.c.bf16 %v3441_v41, %v3444_v44  ;;  %v249_v37 = vpop.permute.xlu1 %248  ;;  %v271_v45 = vpop.permute.xlu0 %270 }
 0x467   :  { %v279_v24 = vmul.f32 %v3007_v17, %v271_v45  ;;  %v258_v54 = vsub.f32 %v218_v51, %v249_v37  ;;  %v1005_v17 = vsel %vm304_vm2, %v2564_v15, %v2565_v38 }
 0x46a   :  { %v293_v46 = vpop.permute.xlu1 %292  ;;  %v251_v48 = vpop.permute.xlu0 %250 }
 0x46b   :  { %v302_v52 = vadd.f32 %v293_v46, %v278_v50  ;;  %v259_v33 = vsub.f32 %v219_v40, %v251_v48 }
 0x46c   :  { %2637 = vrot.lane.b32.xlu0 %v2636_v61, %s2833_s24  ;;  %v1006_v61 = vsel %vm304_vm2, %v2569_v59, %v2570_v60 }
 0x46d   :  { %v307_v56 = vsel %vm304_vm2, %v258_v54, %v302_v52 }
 0x46e   :  { %v295_v53 = vpop.permute.xlu0 %294 }
 0x46f   :  { %v303_v55 = vadd.f32 %v295_v53, %v279_v24 }
 0x471   :  { %v308_v42 = vsel %vm304_vm2, %v259_v33, %v303_v55 }
 0x472   :  { %v1441_v57 = vpack.c.bf16 %v308_v42, %v307_v56  ;;  %v2613_v49 = vpop.permute.xlu1 %2612 }
 0x473   :  { %v2615_v54 = vunpack.i.h.bf16 %v2613_v49  ;;  %v2614_v33 = vunpack.i.l.bf16 %v2613_v49 }
 0x474   :  { %2462 = vmatprep.mubr.msk.bf16.mxu0 %vm54_vm0, %v1441_v57 }
 0x477   :  { %v2618_v11 = vpop.permute.xlu0 %2617 }
 0x478   :  { %v2620_v24 = vunpack.i.h.bf16 %v2618_v11  ;;  %v2619_v52 = vunpack.i.l.bf16 %v2618_v11 }
 0x47a   :  { %v448_v30 = vsel %vm304_vm2, %v2615_v54, %v2620_v24  ;;  %v447_v32 = vsel %vm304_vm2, %v2614_v33, %v2619_v52 }
 0x47b   :  { %v1442_v60 = vpack.c.bf16 %v448_v30, %v447_v32 }
 0x484   :  { %1209 = vxpose.xlu1.b32.start [1/2] (short) (narrow) %v1005_v17, 16 }
 0x488   :  { %1210 = vxpose.xlu1.b32.end [2/2] (short) (narrow) %v1006_v61, 16 }
 0x48a   :  { %1407 = vxpose.xlu0.b32.start [1/2] (short) (narrow) %v867_v63, 16 }
 0x48b   :  { %v2623_v13 = vpop.permute.xlu1 %2622 }
 0x48c   :  { %v2625_v56 = vunpack.i.h.bf16 %v2623_v13  ;;  %v2624_v42 = vunpack.i.l.bf16 %v2623_v13 }
 0x48e   :  { %1408 = vxpose.xlu0.b32.end [2/2] (short) (narrow) %v868_v58, 16 }
 0x48f   :  { %v2628_v12 = vpop.permute.xlu0 %2627 }
 0x490   :  { %v2630_v40 = vunpack.i.h.bf16 %v2628_v12  ;;  %v2629_v53 = vunpack.i.l.bf16 %v2628_v12 }
 0x492   :  { %1607 = vxpose.xlu0.b32.start [1/2] (short) (narrow) %v1007_v16, 16  ;;  %v587_v38 = vsel %vm304_vm2, %v2624_v42, %v2629_v53 }
 0x493   :  { %v3476_v5 = vpop.permute.xlu1 %2632 }
 0x494   :  { %v2635_v41 = vunpack.i.h.bf16 %v3476_v5  ;;  %v2634_v44 = vunpack.i.l.bf16 %v3476_v5 }
 0x496   :  { %1608 = vxpose.xlu0.b32.end [2/2] (short) (narrow) %v1008_v1, 16 }
 0x4db   :  { %v1112_v43 = vpop.xlane.xlu0 %1111 }
 0x4dc   :  { %v1118_v20 = vsub.f32 %v3410_v47, %v1112_v43 }
 0x4de   :  { %v1109_v21 = vpop.xlane.xlu1 %1108  ;;  %v1124_v18 = vmul.f32 1.442695, %v1118_v20 }
 0x4df   :  { %v1117_v14 = vsub.f32 %v3418_v19, %v1109_v21  ;;  %v1106_v22 = vpop.xlane.xlu0 %1105 }
 0x4e0   :  { %v1116_v2 = vsub.f32 %v3414_v6, %v1106_v22 }
 0x4e1   :  { %v1122_v26 = vmul.f32 1.442695, %v1117_v14 }
 0x4e2   :  { %v1120_v29 = vmul.f32 1.442695, %v1116_v2 }
 0x4e3   :  { %2701 = vpow2.f32 %v1122_v26  ;;  %v1115_v35 = vpop.xlane.xlu0 %1114 }
 0x4e4   :  { %2703 = vpow2.f32 %v1120_v29  ;;  %v1119_v36 = vsub.f32 %v3424_v10, %v1115_v35 }
 0x4e5   :  { %2705 = vpow2.f32 %v1124_v18 }
 0x4e6   :  { %v1126_v39 = vmul.f32 1.442695, %v1119_v36 }
 0x4e7   :  { %v2638_v46 = vpop.permute.xlu0 %2637 }
 0x4e8   :  { %2707 = vpow2.f32 %v1126_v39  ;;  %v2640_v17 = vunpack.i.h.bf16 %v2638_v46  ;;  %v2639_v31 = vunpack.i.l.bf16 %v2638_v46 }
 0x4ea   :  { %v728_v61 = vsel %vm304_vm2, %v2635_v41, %v2640_v17  ;;  %v727_v3 = vsel %vm304_vm2, %v2634_v44, %v2639_v31 }
 0x4eb   :  { %v1641_v0 = vpack.c.bf16 %v728_v61, %v727_v3 }
 0x4ed   :  { %v3482_v34 = vpop.eup %2701 }
 0x4ee   :  { %v3484_v37 = vpop.eup %2703 }
 0x4ef   :  { %v1140_v47 = vpack.c.bf16 %v3482_v34, %v3484_v37  ;;  %v3488_v19 = vpop.eup %2705 }
 0x4f0   :  { %v1134_v42 = vsel %vm54_vm0, %v3488_v19, 0.0 }
 0x4f1   :  { %2444 = vmatprep.mubr.msk.bf16.mxu1 %vm54_vm0, %v1140_v47 }
 0x4f2   :  { %v3491_v6 = vpop.eup %2707 }
 0x4f3   :  { %v1141_v45 = vpack.c.bf16 %v3491_v6, %v3488_v19 }
 0x4f5   :  { %2445 = vmatmul.mubr.msk.bf16.vlgmr.msra.gmra.mrb[4].mxu1 %vm54_vm0, %v1141_v45 }
 0x4f6   :  { %2450 = vmatprep.mubr.msk.bf16.mxu1 %vm54_vm0, %v1242_v25  ;;  %v588_v25 = vsel %vm304_vm2, %v2625_v56, %v2630_v40 }
 0x4f7   :  { %v1640_v59 = vpack.c.bf16 %v588_v25, %v587_v38 }
 0x504   :  { %v1225_v10 = vpop.trf.xlu1 }
 0x508   :  { %v1226_v48 = vpop.trf.xlu1 }
 0x509   :  { %v1241_v50 = vpack.c.bf16 %v1226_v48, %v1225_v10 }
 0x50a   :  { %v1423_v51 = vpop.trf.xlu0 }
 0x50b   :  { %2448 = vmatprep.subr.bf16.mxu1 %v1241_v50 }
 0x50c   :  { %2449 = vmatpush3.bf16.msra.mxu1 %v1241_v50 }
 0x50e   :  { %v1424_v55 = vpop.trf.xlu0 }
 0x50f   :  { %v1439_v57 = vpack.c.bf16 %v1424_v55, %v1423_v51  ;;  %2451 = vmatmul.mubr.msk.bf16.vlgmr.msra.gmra.mrb[8].mxu1 %vm54_vm0, %v1243_v23 }
 0x511   :  { %2460 = vmatprep.subr.bf16.mxu0 %v1439_v57 }
 0x512   :  { %2461 = vmatpush3.bf16.msra.mxu0 %v1439_v57  ;;  %v1623_v15 = vpop.trf.xlu0  ;;  %v1137_v57 = vsel %vm54_vm0, %v3491_v6, 0.0 }
 0x515   :  { %2463 = vmatmul.mubr.msk.bf16.vlgmr.msra.gmra.mrb[4].mxu0 %vm54_vm0, %v1442_v60 }
 0x516   :  { %2474 = vmatprep.mubr.msk.bf16.mxu0 %vm54_vm0, %v1640_v59  ;;  %v1624_v23 = vpop.trf.xlu0 }
 0x517   :  { %v1639_v62 = vpack.c.bf16 %v1624_v23, %v1623_v15 }
 0x519   :  { %2472 = vmatprep.subr.bf16.mxu0 %v1639_v62 }
 0x51a   :  { %2473 = vmatpush3.bf16.msra.mxu0 %v1639_v62 }
 0x51d   :  { %2475 = vmatmul.mubr.msk.bf16.vlgmr.msra.gmra.mrb[8].mxu0 %vm54_vm0, %v1641_v0 }
 0x5c8   :  { %v3515_v63 = vpop.f32.mrb[4].mxu1 }
 0x5c9   :  { %v3517_v7 = vpop.f32.mrb[5].mxu1 }
 0x5ca   :  { %v3519_v4 = vpop.f32.mrb[6].mxu1 }
 0x5cb   :  { %v3521_v58 = vpop.f32.mrb[7].mxu1 }
 0x5e2   :  { %v2452_v9 = vpop.f32.mrb[8].mxu1 }
 0x5e3   :  { %v1284_v8 = vpop.f32.mrb[9].mxu1  ;;  %v1301_v24 = vmul.f32 0.25, %v2452_v9 }
 0x5e4   :  { %v2453_v16 = vpop.f32.mrb[10].mxu1  ;;  %v1299_v50 = vmul.f32 0.25, %v1284_v8 }
 0x5e5   :  { %v1287_v1 = vpop.f32.mrb[11].mxu1  ;;  %v1302_v53 = vmul.f32 0.25, %v2453_v16  ;;  %v1309_v54 = vsel %vm54_vm0, %v1301_v24, -inf }
 0x5e6   :  { %v1303_v40 = vsel %vm54_vm0, %v1299_v50, -inf  ;;  %v3545_v33 = vmul.f32 0.25, %v1287_v1 }
 0x5e7   :  { %v1312_v55 = vsel %vm54_vm0, %v1302_v53, -inf }
 0x5e8   :  { %v2464_v49 = vpop.f32.mrb[4].mxu0  ;;  %v1306_v56 = vsel %vm54_vm0, %v3545_v33, -inf }
 0x5e9   :  { %v1483_v11 = vpop.f32.mrb[5].mxu0  ;;  %v1500_v43 = vmul.f32 0.25, %v2464_v49 }
 0x5ea   :  { %v3523_v13 = vmul.f32 0.25, %v1483_v11  ;;  %v2465_v12 = vpop.f32.mrb[6].mxu0 }
 0x5eb   :  { %v1486_v5 = vpop.f32.mrb[7].mxu0  ;;  %v1501_v14 = vmul.f32 0.25, %v2465_v12  ;;  %v1508_v26 = vsel %vm54_vm0, %v1500_v43, -inf }
 0x5ec   :  { %v3525_v21 = vmul.f32 0.25, %v1486_v5  ;;  %v1502_v20 = vsel %vm54_vm0, %v3523_v13, -inf }
 0x5ed   :  { %1503 = vmax.xlane.f32.xlu0 %v1502_v20  ;;  %v1511_v36 = vsel %vm54_vm0, %v1501_v14, -inf }
 0x5ee   :  { %v1505_v22 = vsel %vm54_vm0, %v3525_v21, -inf }
 0x5ef   :  { %1506 = vmax.xlane.f32.xlu1 %v1505_v22 }
 0x5f0   :  { %v2476_v2 = vpop.f32.mrb[8].mxu0 }
 0x5f1   :  { %v3532_v29 = vmul.f32 0.25, %v2476_v2  ;;  %1509 = vmax.xlane.f32.xlu0 %v1508_v26  ;;  %v1682_v18 = vpop.f32.mrb[9].mxu0 }
 0x5f2   :  { %v2477_v35 = vpop.f32.mrb[10].mxu0  ;;  %v1697_v10 = vmul.f32 0.25, %v1682_v18 }
 0x5f3   :  { %v3535_v39 = vmul.f32 0.25, %v2477_v35  ;;  %v1685_v47 = vpop.f32.mrb[11].mxu0  ;;  %1512 = vmax.xlane.f32.xlu1 %v1511_v36  ;;  %v1707_v45 = vsel %vm54_vm0, %v3532_v29, -inf }
 0x5f4   :  { %v1698_v48 = vmul.f32 0.25, %v1685_v47  ;;  %v1701_v51 = vsel %vm54_vm0, %v1697_v10, -inf }
 0x5f5   :  { %1708 = vmax.xlane.f32.xlu0 %v1707_v45  ;;  %v1710_v46 = vsel %vm54_vm0, %v3535_v39, -inf }
 0x5f6   :  { %v1704_v52 = vsel %vm54_vm0, %v1698_v48, -inf }
 0x5f7   :  { %1711 = vmax.xlane.f32.xlu1 %v1710_v46 }
 0x5f9   :  { %1702 = vmax.xlane.f32.xlu0 %v1701_v51 }
 0x5fb   :  { %1705 = vmax.xlane.f32.xlu1 %v1704_v52 }
 0x5fd   :  { %1304 = vmax.xlane.f32.xlu0 %v1303_v40 }
 0x5ff   :  { %1310 = vmax.xlane.f32.xlu1 %v1309_v54 }
 0x603   :  { %1313 = vmax.xlane.f32.xlu1 %v1312_v55 }
 0x607   :  { %1307 = vmax.xlane.f32.xlu1 %v1306_v56 }
 0x613   :  { %1341 = vrot.lane.b32.xlu0 %v3018_v27, %s2829_s12 }
 0x618   :  { %1541 = vrot.lane.b32.xlu1 %v3022_v28, %s2835_s9 }
 0x61c   :  { %1739 = vrot.lane.b32.xlu1 %v3022_v28, %s2829_s12 }
 0x632   :  { %1135 = vadd.xlane.f32.xlu0 %v1134_v42  ;;  %v1128_v42 = vsel %vm54_vm0, %v3484_v37, 0.0 }
 0x640   :  { %1138 = vadd.xlane.f32.xlu1 %v1137_v57 }
 0x67a   :  { %v1504_v30 = vpop.xlane.xlu0 %1503 }
 0x67b   :  { %v1514_v2 = vsub.f32 %v3523_v13, %v1504_v30 }
 0x67c   :  { %v1507_v32 = vpop.xlane.xlu1 %1506 }
 0x67e   :  { %v1510_v25 = vpop.xlane.xlu0 %1509 }
 0x67f   :  { %v1516_v38 = vsub.f32 %v1500_v43, %v1510_v25  ;;  %v1515_v43 = vsub.f32 %v3525_v21, %v1507_v32 }
 0x680   :  { %v1513_v15 = vpop.xlane.xlu1 %1512 }
 0x681   :  { %v1522_v27 = vmul.f32 1.442695, %v1516_v38  ;;  %v1517_v60 = vsub.f32 %v1501_v14, %v1513_v15 }
 0x682   :  { %v1709_v59 = vpop.xlane.xlu0 %1708 }
 0x683   :  { %2709 = vpow2.f32 %v1522_v27  ;;  %v1524_v17 = vmul.f32 1.442695, %v1517_v60  ;;  %v1715_v6 = vsub.f32 %v3532_v29, %v1709_v59  ;;  %v1520_v29 = vmul.f32 1.442695, %v1515_v43 }
 0x684   :  { %v1712_v31 = vpop.xlane.xlu1 %1711  ;;  %v1131_v59 = vsel %vm54_vm0, %v3482_v34, 0.0 }
 0x685   :  { %2711 = vpow2.f32 %v1524_v17  ;;  %v1721_v12 = vmul.f32 1.442695, %v1715_v6  ;;  %v1716_v18 = vsub.f32 %v3535_v39, %v1712_v31 }
 0x686   :  { %v1703_v28 = vpop.xlane.xlu0 %1702 }
 0x687   :  { %v1713_v41 = vsub.f32 %v1697_v10, %v1703_v28  ;;  %v1518_v10 = vmul.f32 1.442695, %v1514_v2 }
 0x688   :  { %v1706_v19 = vpop.xlane.xlu1 %1705 }
 0x689   :  { %v1717_v44 = vmul.f32 1.442695, %v1713_v41  ;;  %v1714_v23 = vsub.f32 %v1698_v48, %v1706_v19  ;;  %v1723_v48 = vmul.f32 1.442695, %v1716_v18 }
 0x68a   :  { %v1305_v62 = vpop.xlane.xlu0 %1304 }
 0x68b   :  { %2713 = vpow2.f32 %v1717_v44  ;;  %v1719_v61 = vmul.f32 1.442695, %v1714_v23  ;;  %v1315_v3 = vsub.f32 %v1299_v50, %v1305_v62 }
 0x68c   :  { %v1311_v0 = vpop.xlane.xlu1 %1310 }
 0x68d   :  { %v3561_v9 = vpop.eup %2709  ;;  %2715 = vpow2.f32 %v1719_v61  ;;  %v1319_v8 = vmul.f32 1.442695, %v1315_v3  ;;  %v1317_v16 = vsub.f32 %v1301_v24, %v1311_v0 }
 0x68e   :  { %v1342_v1 = vpop.permute.xlu0 %1341  ;;  %v1532_v49 = vsel %vm54_vm0, %v3561_v9, 0.0 }
 0x68f   :  { %v3565_v11 = vpop.eup %2711  ;;  %2717 = vpow2.f32 %v1319_v8  ;;  %v1323_v5 = vmul.f32 1.442695, %v1317_v16  ;;  %2454 = vmatprep.subr.bf16.mxu1 %v1342_v1  ;;  %1533 = vadd.xlane.f32.xlu1 %v1532_v49 }
 0x690   :  { %2455 = vmatpush3.bf16.msra.mxu1 %v1342_v1  ;;  %v1314_v20 = vpop.xlane.xlu1 %1313  ;;  %v1535_v14 = vsel %vm54_vm0, %v3565_v11, 0.0  ;;  %v1539_v17 = vpack.c.bf16 %v3565_v11, %v3561_v9 }
 0x691   :  { %2719 = vpow2.f32 %v1323_v5  ;;  %v1318_v22 = vsub.f32 %v1302_v53, %v1314_v20  ;;  %1536 = vadd.xlane.f32.xlu0 %v1535_v14 }
 0x692   :  { %2721 = vpow2.f32 %v1721_v12 }
 0x693   :  { %v1325_v26 = vmul.f32 1.442695, %v1318_v22 }
 0x694   :  { %v1308_v35 = vpop.xlane.xlu1 %1307 }
 0x695   :  { %v2714_v36 = vpop.eup %2713  ;;  %2723 = vpow2.f32 %v1325_v26  ;;  %v1316_v21 = vsub.f32 %v3545_v33, %v1308_v35 }
 0x696   :  { %v1725_v47 = vsel %vm54_vm0, %v2714_v36, 0.0  ;;  %2725 = vpow2.f32 %v1520_v29 }
 0x697   :  { %v2716_v45 = vpop.eup %2715  ;;  %v1321_v46 = vmul.f32 1.442695, %v1316_v21  ;;  %1726 = vadd.xlane.f32.xlu1 %v1725_v47  ;;  %v2674_v21 = vld [vmem:[%s3748_s4 + $0x8] sm:$0xff]   ;;  %v2675_v47 = vld [vmem:[%s3748_s4 + $0x10] sm:$0xff]  }
 0x698   :  { %v1542_v50 = vpop.permute.xlu1 %1541  ;;  %v1728_v13 = vsel %vm54_vm0, %v2716_v45, 0.0  ;;  %v1737_v31 = vpack.c.bf16 %v2716_v45, %v2714_v36 }
 0x699   :  { %v2718_v51 = vpop.eup %2717  ;;  %2727 = vpow2.f32 %v1321_v46  ;;  %1729 = vadd.xlane.f32.xlu0 %v1728_v13  ;;  %2466 = vmatprep.subr.bf16.mxu1 %v1542_v50 }
 0x69a   :  { %2729 = vpow2.f32 %v1518_v10  ;;  %v1327_v24 = vsel %vm54_vm0, %v2718_v51, 0.0 }
 0x69b   :  { %v2720_v39 = vpop.eup %2719  ;;  %2731 = vpow2.f32 %v1723_v48 }
 0x69c   :  { %v1333_v52 = vsel %vm54_vm0, %v2720_v39, 0.0  ;;  %v2722_v40 = vpop.eup %2721  ;;  %v1740_v27 = vpop.permute.xlu1 %1739 }
 0x69d   :  { %1328 = vadd.xlane.f32.xlu0 %v1327_v24  ;;  %1334 = vadd.xlane.f32.xlu1 %v1333_v52  ;;  %v1731_v54 = vsel %vm54_vm0, %v2722_v40, 0.0 }
 0x69f   :  { %v2724_v53 = vpop.eup %2723 }
 0x6a0   :  { %v1336_v33 = vsel %vm54_vm0, %v2724_v53, 0.0  ;;  %v2726_v55 = vpop.eup %2725  ;;  %v1340_v25 = vpack.c.bf16 %v2724_v53, %v2720_v39 }
 0x6a1   :  { %1732 = vadd.xlane.f32.xlu1 %v1731_v54  ;;  %1337 = vadd.xlane.f32.xlu0 %v1336_v33  ;;  %v1529_v28 = vsel %vm54_vm0, %v2726_v55, 0.0  ;;  %v2676_v54 = vld [vmem:[%s3748_s4 + $0x18] sm:$0xff]  }
 0x6a3   :  { %v2728_v56 = vpop.eup %2727 }
 0x6a4   :  { %v1330_v57 = vsel %vm54_vm0, %v2728_v56, 0.0  ;;  %v1339_v30 = vpack.c.bf16 %v2728_v56, %v2718_v51  ;;  %v2730_v32 = vpop.eup %2729 }
 0x6a5   :  { %1129 = vadd.xlane.f32.xlu1 %v1128_v42  ;;  %1331 = vadd.xlane.f32.xlu0 %v1330_v57  ;;  %v2732_v38 = vpop.eup %2731  ;;  %v1538_v15 = vpack.c.bf16 %v2726_v55, %v2730_v32  ;;  %v1526_v60 = vsel %vm54_vm0, %v2730_v32, 0.0 }
 0x6a6   :  { %2456 = vmatprep.mubr.msk.bf16.mxu1 %vm54_vm0, %v1339_v30  ;;  %v1734_v37 = vsel %vm54_vm0, %v2732_v38, 0.0  ;;  %v1738_v41 = vpack.c.bf16 %v2732_v38, %v2722_v40 }
 0x6a7   :  { %2457 = vmatmul.mubr.msk.bf16.vlgmr.msra.gmra.mrb[12].mxu1 %vm54_vm0, %v1340_v25 }
 0x6a8   :  { %2467 = vmatpush3.bf16.msra.mxu1 %v1542_v50  ;;  %2468 = vmatprep.mubr.msk.bf16.mxu1 %vm54_vm0, %v1538_v15 }
 0x6a9   :  { %2478 = vmatprep.subr.bf16.mxu1 %v1740_v27  ;;  %1527 = vadd.xlane.f32.xlu1 %v1526_v60 }
 0x6aa   :  { %1735 = vadd.xlane.f32.xlu0 %v1734_v37 }
 0x6ae   :  { %1132 = vadd.xlane.f32.xlu0 %v1131_v59 }
 0x6af   :  { %2469 = vmatmul.mubr.msk.bf16.vlgmr.msra.gmra.mrb[16].mxu1 %vm54_vm0, %v1539_v17 }
 0x6b0   :  { %2479 = vmatpush3.bf16.msra.mxu1 %v1740_v27  ;;  %2480 = vmatprep.mubr.msk.bf16.mxu1 %vm54_vm0, %v1737_v31 }
 0x6b2   :  { %1530 = vadd.xlane.f32.xlu0 %v1529_v28 }
 0x6b7   :  { %2481 = vmatmul.mubr.msk.bf16.vlgmr.msra.gmra.mrb[20].mxu1 %vm54_vm0, %v1738_v41 }
 0x6bf   :  { %v1136_v19 = vpop.xlane.xlu0 %1135 }
 0x6c0   :  { %2733 = vrcp.f32 %v1136_v19 }
 0x6ca   :  { %v2734_v34 = vpop.eup %2733 }
 0x6cb   :  { %v1207_v62 = vmul.f32 %v2734_v34, %v3515_v63  ;;  %v2673_v63 = vld [vmem:[%s3748_s4] sm:$0xff]  }
 0x6cc   :  { %2484 = vmatprep.subr.bf16.mxu0 %v2673_v63 }
 0x6cd   :  { %v1139_v44 = vpop.xlane.xlu1 %1138  ;;  %2485 = vmatpush3.bf16.msra.mxu0 %v2673_v63 }
 0x6ce   :  { %2735 = vrcp.f32 %v1139_v44  ;;  %2486 = vmatprep.subr.bf16.mxu0 %v2674_v21 }
 0x6d1   :  { %2487 = vmatpush3.bf16.msra.mxu0 %v2674_v21 }
 0x6d2   :  { %2488 = vmatprep.subr.bf16.mxu0 %v2675_v47 }
 0x6d5   :  { %2489 = vmatpush3.bf16.msra.mxu0 %v2675_v47 }
 0x6d6   :  { %2490 = vmatprep.subr.bf16.mxu0 %v2676_v54 }
 0x6d8   :  { %v2736_v23 = vpop.eup %2735 }
 0x6d9   :  { %v1208_v6 = vmul.f32 %v2736_v23, %v3519_v4  ;;  %2491 = vmatpush3.bf16.msra.mxu0 %v2676_v54 }
 0x6db   :  { %v2641_v61 = vpack.i.bf16 %v1208_v6, %v1207_v62 }
 0x6dd   :  { %2642 = vrot.lane.b32.xlu1 %v2641_v61, %s2829_s12 }
 0x71c   :  { %v1534_v8 = vpop.xlane.xlu1 %1533 }
 0x71e   :  { %v1537_v3 = vpop.xlane.xlu0 %1536 }
 0x724   :  { %v1727_v16 = vpop.xlane.xlu1 %1726 }
 0x726   :  { %v1730_v0 = vpop.xlane.xlu0 %1729 }
 0x72a   :  { %v1329_v9 = vpop.xlane.xlu0 %1328  ;;  %v1335_v49 = vpop.xlane.xlu1 %1334 }
 0x72b   :  { %2737 = vrcp.f32 %v1329_v9 }
 0x72c   :  { %2739 = vrcp.f32 %v1335_v49 }
 0x72e   :  { %v1338_v1 = vpop.xlane.xlu0 %1337  ;;  %v1733_v18 = vpop.xlane.xlu1 %1732 }
 0x72f   :  { %2741 = vrcp.f32 %v1338_v1 }
 0x732   :  { %v1332_v11 = vpop.xlane.xlu0 %1331  ;;  %v1130_v17 = vpop.xlane.xlu1 %1129 }
 0x733   :  { %2743 = vrcp.f32 %v1332_v11 }
 0x734   :  { %2745 = vrcp.f32 %v1534_v8 }
 0x735   :  { %v2738_v4 = vpop.eup %2737  ;;  %2747 = vrcp.f32 %v1537_v3 }
 0x736   :  { %v2740_v5 = vpop.eup %2739  ;;  %2749 = vrcp.f32 %v1727_v16  ;;  %v1528_v28 = vpop.xlane.xlu1 %1527 }
 0x737   :  { %v1736_v45 = vpop.xlane.xlu0 %1735  ;;  %2751 = vrcp.f32 %v1733_v18 }
 0x738   :  { %2753 = vrcp.f32 %v1736_v45 }
 0x739   :  { %v2742_v20 = vpop.eup %2741  ;;  %2755 = vrcp.f32 %v1730_v0 }
 0x73a   :  { %2757 = vrcp.f32 %v1130_v17 }
 0x73b   :  { %v1133_v31 = vpop.xlane.xlu0 %1132 }
 0x73c   :  { %2759 = vrcp.f32 %v1133_v31 }
 0x73d   :  { %v2744_v22 = vpop.eup %2743  ;;  %2761 = vrcp.f32 %v1528_v28 }
 0x73e   :  { %v2746_v50 = vpop.eup %2745 }
 0x73f   :  { %v2748_v51 = vpop.eup %2747  ;;  %v1531_v44 = vpop.xlane.xlu0 %1530 }
 0x740   :  { %v2750_v33 = vpop.eup %2749  ;;  %2763 = vrcp.f32 %v1531_v44 }
 0x741   :  { %v2752_v56 = vpop.eup %2751 }
 0x742   :  { %v2754_v57 = vpop.eup %2753 }
 0x743   :  { %v2756_v32 = vpop.eup %2755 }
 0x744   :  { %v2758_v19 = vpop.eup %2757 }
 0x745   :  { %v1205_v61 = vmul.f32 %v2758_v19, %v3517_v7 }
 0x746   :  { %v2760_v34 = vpop.eup %2759 }
 0x747   :  { %v1206_v3 = vmul.f32 %v2760_v34, %v3521_v58 }
 0x74f   :  { %v2643_v41 = vpop.permute.xlu1 %2642 }
 0x750   :  { %v2645_v23 = vunpack.i.h.bf16 %v2643_v41  ;;  %v2644_v62 = vunpack.i.l.bf16 %v2643_v41 }
 0x752   :  { %v1830_v16 = vsel %vm54_vm0, %v1206_v3, %v2645_v23  ;;  %v1829_v1 = vsel %vm54_vm0, %v1205_v61, %v2644_v62  ;;  %v2677_v62 = vld [vmem:[%s3749_s5] sm:$0xff]  }
 0x753   :  { %2496 = vmatprep.subr.bf16.mxu1 %v2677_v62  ;;  %v3683_v61 = vld [vmem:[%s3750_s6] sm:$0xff]  }
 0x754   :  { %2497 = vmatpush3.bf16.msra.mxu1 %v2677_v62 }
 0x77a   :  { %v2458_v12 = vpop.f32.mrb[12].mxu1 }
 0x77b   :  { %v1384_v43 = vpop.f32.mrb[13].mxu1  ;;  %v1405_v2 = vmul.f32 %v2740_v5, %v2458_v12 }
 0x77c   :  { %v2459_v14 = vpop.f32.mrb[14].mxu1  ;;  %v1403_v35 = vmul.f32 %v2738_v4, %v1384_v43  ;;  %v2762_v43 = vpop.eup %2761 }
 0x77d   :  { %v1406_v26 = vmul.f32 %v2742_v20, %v2459_v14  ;;  %v1387_v29 = vpop.f32.mrb[15].mxu1 }
 0x77e   :  { %v1404_v36 = vmul.f32 %v2744_v22, %v1387_v29  ;;  %v2764_v22 = vpop.eup %2763 }
 0x77f   :  { %v2646_v10 = vpack.i.bf16 %v1406_v26, %v1405_v2 }
 0x780   :  { %v2651_v46 = vpack.i.bf16 %v1404_v36, %v1403_v35 }
 0x781   :  { %2647 = vrot.lane.b32.xlu1 %v2646_v10, %s2837_s11 }
 0x782   :  { %2652 = vrot.lane.b32.xlu0 %v2651_v46, %s2835_s9  ;;  %v2470_v48 = vpop.f32.mrb[16].mxu1 }
 0x783   :  { %v3609_v13 = vpop.f32.mrb[17].mxu1  ;;  %v1605_v24 = vmul.f32 %v2746_v50, %v2470_v48 }
 0x784   :  { %v2471_v39 = vpop.f32.mrb[18].mxu1  ;;  %v1603_v26 = vmul.f32 %v2762_v43, %v3609_v13 }
 0x785   :  { %v1606_v52 = vmul.f32 %v2748_v51, %v2471_v39  ;;  %v1587_v40 = vpop.f32.mrb[19].mxu1 }
 0x786   :  { %v1604_v29 = vmul.f32 %v2764_v22, %v1587_v40 }
 0x787   :  { %v2656_v53 = vpack.i.bf16 %v1606_v52, %v1605_v24  ;;  %v2797_v52 = vld [vmem:[%s3744_s0] sm:$0xff] }
 0x789   :  { %2657 = vrot.lane.b32.xlu1 %v2656_v53, %s2829_s12 }
 0x78a   :  { %v2482_v55 = vpop.f32.mrb[20].mxu1 }
 0x78b   :  { %v1782_v42 = vpop.f32.mrb[21].mxu1  ;;  %v1803_v25 = vmul.f32 %v2752_v56, %v2482_v55  ;;  %v2799_v56 = vld [vmem:[%s3744_s0 + $0x8] sm:$0xff] }
 0x78c   :  { %v2483_v30 = vpop.f32.mrb[22].mxu1  ;;  %v1801_v27 = vmul.f32 %v2750_v33, %v1782_v42  ;;  %v2798_v33 = vld [vmem:[%s3744_s0 + $0x10] sm:$0xff] }
 0x78d   :  { %v1804_v38 = vmul.f32 %v2754_v57, %v2483_v30  ;;  %v1785_v15 = vpop.f32.mrb[23].mxu1  ;;  %v2800_v30 = vld [vmem:[%s3744_s0 + $0x18] sm:$0xff] }
 0x78e   :  { %v1802_v60 = vmul.f32 %v2756_v32, %v1785_v15 }
 0x78f   :  { %v2666_v37 = vpack.i.bf16 %v1804_v38, %v1803_v25 }
 0x790   :  { %v2661_v59 = vpack.i.bf16 %v1802_v60, %v1801_v27 }
 0x791   :  { %2667 = vrot.lane.b32.xlu1 %v2666_v37, %s2837_s11 }
 0x792   :  { %2662 = vrot.lane.b32.xlu0 %v2661_v59, %s2835_s9 }
 0x7f3   :  { %v2648_v6 = vpop.permute.xlu1 %2647 }
 0x7f4   :  { %v2653_v0 = vpop.permute.xlu0 %2652  ;;  %v2650_v49 = vunpack.i.h.bf16 %v2648_v6  ;;  %v2649_v11 = vunpack.i.l.bf16 %v2648_v6  ;;  %v2678_v6 = vld [vmem:[%s3749_s5 + $0x8] sm:$0xff]  }
 0x7f5   :  { %v2655_v9 = vunpack.i.h.bf16 %v2653_v0  ;;  %v2654_v8 = vunpack.i.l.bf16 %v2653_v0  ;;  %2498 = vmatprep.subr.bf16.mxu1 %v2678_v6 }
 0x7f6   :  { %2499 = vmatpush3.bf16.msra.mxu1 %v2678_v6 }
 0x7f7   :  { %v1831_v63 = vsel %vm160_vm1, %v1829_v1, %v2654_v8  ;;  %v1832_v4 = vsel %vm160_vm1, %v1830_v16, %v2655_v9  ;;  %2504 = vmatprep.subr.bf16.mxu1 %v3683_v61 }
 0x7f8   :  { %v1834_v12 = vsel %vm1833_vm3, %v1831_v63, %v2649_v11  ;;  %v1835_v7 = vsel %vm1833_vm3, %v1832_v4, %v2650_v49 }
 0x7f9   :  { %v1866_v58 = vpack.c.bf16 %v1835_v7, %v1834_v12 }
 0x7fb   :  { %2492 = vmatprep.mubr.msk.bf16.mxu0 %vm1900_vm4, %v1866_v58  ;;  %v2658_v5 = vpop.permute.xlu1 %2657 }
 0x7fc   :  { %v2660_v20 = vunpack.i.h.bf16 %v2658_v5  ;;  %v2659_v14 = vunpack.i.l.bf16 %v2658_v5 }
 0x7fe   :  { %v1861_v21 = vsel %vm54_vm0, %v1604_v29, %v2660_v20  ;;  %v1860_v47 = vsel %vm54_vm0, %v1603_v26, %v2659_v14 }
 0x803   :  { %v2668_v2 = vpop.permute.xlu1 %2667 }
 0x804   :  { %v2663_v18 = vpop.permute.xlu0 %2662  ;;  %v2670_v45 = vunpack.i.h.bf16 %v2668_v2  ;;  %v2669_v10 = vunpack.i.l.bf16 %v2668_v2 }
 0x805   :  { %v2665_v35 = vunpack.i.h.bf16 %v2663_v18  ;;  %v2664_v36 = vunpack.i.l.bf16 %v2663_v18 }
 0x807   :  { %v1862_v46 = vsel %vm160_vm1, %v1860_v47, %v2664_v36  ;;  %v1863_v48 = vsel %vm160_vm1, %v1861_v21, %v2665_v35 }
 0x808   :  { %v1864_v50 = vsel %vm1833_vm3, %v1862_v46, %v2669_v10  ;;  %v1865_v51 = vsel %vm1833_vm3, %v1863_v48, %v2670_v45 }
 0x809   :  { %v1867_v39 = vpack.c.bf16 %v1865_v51, %v1864_v50 }
 0x80b   :  { %2493 = vmatmul.mubr.msk.bf16.vlgmr.msra.gmra.mrb[12].mxu0 %vm1900_vm4, %v1867_v39 }
 0x8de   :  { %v2494_v13 = vpop.f32.mrb[12].mxu0 }
 0x8df   :  { %v1941_v24 = vpop.f32.mrb[13].mxu0  ;;  %v3642_v55 = vadd.f32 %v2798_v33, %v2494_v13 }
 0x8e0   :  { %v3637_v40 = vadd.f32 %v2797_v52, %v1941_v24  ;;  %v2495_v53 = vpop.f32.mrb[14].mxu0  ;;  %v2361_v24 = vld [vmem:[%s3746_s2] ss:$0 sm:$0xff] }
 0x8e1   :  { %v1944_v54 = vpop.f32.mrb[15].mxu0  ;;  %v3654_v32 = vadd.f32 %v2800_v30, %v2495_v53  ;;  %v1963_v38 = vmul.f32 %v3642_v55, %v3642_v55 }
 0x8e2   :  { %v3647_v42 = vadd.f32 %v2799_v56, %v1944_v54  ;;  %v1961_v57 = vmul.f32 %v3637_v40, %v3637_v40 }
 0x8e3   :  { %v1964_v15 = vmul.f32 %v3654_v32, %v3654_v32  ;;  %v1971_v37 = vsel %vm54_vm0, %v1963_v38, 0.0 }
 0x8e4   :  { %1997 = vrot.lane.b32.xlu0 %v1961_v57, %s2825_s21  ;;  %v1962_v25 = vmul.f32 %v3647_v42, %v3647_v42  ;;  %v1965_v27 = vsel %vm54_vm0, %v1961_v57, 0.0 }
 0x8e5   :  { %v1974_v60 = vsel %vm54_vm0, %v1964_v15, 0.0 }
 0x8e6   :  { %1999 = vrot.lane.b32.xlu1 %v1962_v25, %s2825_s21  ;;  %v1968_v59 = vsel %vm54_vm0, %v1962_v25, 0.0 }
 0x8e8   :  { %2001 = vrot.lane.b32.xlu0 %v1963_v38, %s2825_s21 }
 0x8ea   :  { %2003 = vrot.lane.b32.xlu1 %v1964_v15, %s2825_s21 }
 0x907   :  { %1966 = vadd.xlane.f32.xlu0 %v1965_v27 }
 0x90b   :  { %1975 = vadd.xlane.f32.xlu0 %v1974_v60 }
 0x90e   :  { %1972 = vadd.xlane.f32.xlu1 %v1971_v37 }
 0x912   :  { %1969 = vadd.xlane.f32.xlu1 %v1968_v59 }
 0x956   :  { %v1998_v17 = vpop.permute.xlu0 %1997 }
 0x957   :  { %v2009_v31 = vsel %vm54_vm0, %v1998_v17, 0.0 }
 0x958   :  { %2010 = vadd.xlane.f32.xlu0 %v2009_v31  ;;  %v2000_v28 = vpop.permute.xlu1 %1999 }
 0x959   :  { %v2012_v19 = vsel %vm54_vm0, %v2000_v28, 0.0  ;;  %v2680_v28 = vld [vmem:[%s3750_s6 + $0x8] sm:$0xff]  }
 0x95a   :  { %v2002_v41 = vpop.permute.xlu0 %2001 }
 0x95b   :  { %v2015_v44 = vsel %vm54_vm0, %v2002_v41, 0.0  ;;  %v2681_v41 = vld [vmem:[%s3751_s7] sm:$0xff]  }
 0x95c   :  { %2013 = vadd.xlane.f32.xlu0 %v2012_v19  ;;  %v2004_v34 = vpop.permute.xlu1 %2003  ;;  %2016 = vadd.xlane.f32.xlu1 %v2015_v44  ;;  %v2682_v19 = vld [vmem:[%s3751_s7 + $0x8] sm:$0xff]   ;;  %v2683_v44 = vld [vmem:[%s3751_s7 + $0x10] sm:$0xff]  }
 0x95d   :  { %v2018_v23 = vsel %vm54_vm0, %v2004_v34, 0.0  ;;  %2512 = vmatprep.subr.bf16.mxu0 %v2681_v41  ;;  %v2684_v34 = vld [vmem:[%s3751_s7 + $0x18] sm:$0xff]   ;;  %s2839_s7 = smov [#allocation2]  }
 0x95e   :  { %2513 = vmatpush3.bf16.msra.mxu0 %v2681_v41  ;;  %s2323_s20 = sshll.u32 %s2839_s7, 4  ;;  %s2324_s20 = int_to_ptr.vmem [resolvable:$true] %s2323_s20 }
 0x95f   :  { %2514 = vmatprep.subr.bf16.mxu0 %v2682_v19  ;;  %s2801_s22 = scalar_lea.vmem %s2324_s20, 512  ;;  %p2806_p1 = scmp.lt.s32.totalorder %s2324_s20, %s2324_s20 }
 0x960   :  { %2019 = vadd.xlane.f32.xlu0 %v2018_v23  ;;  %p2802_p0 = scmp.ne.s32.totalorder %s2324_s20, %s2801_s22  ;;  %p2807_p2 = scmp.lt.s32.totalorder %s2801_s22, %s2801_s22 }
 0x962   :  { %2515 = vmatpush3.bf16.msra.mxu0 %v2682_v19  ;;  %p2808_p3 = por %p2807_p2, %p2806_p1 }
 0x963   :  { %2516 = vmatprep.subr.bf16.mxu0 %v2683_v44 }
 0x964   :  { %p2809_p4 = pnand %p2808_p3, %p2802_p0 }
 0x966   :  { %2517 = vmatpush3.bf16.msra.mxu0 %v2683_v44 }
 0x967   :  { %2518 = vmatprep.subr.bf16.mxu0 %v2684_v34 }
 0x96a   :  { %2519 = vmatpush3.bf16.msra.mxu0 %v2684_v34 }
 0x994   :  { %v1967_v3 = vpop.xlane.xlu0 %1966 }
 0x995   :  { %v1977_v9 = vmul.f32 0.0625, %v1967_v3 }
 0x997   :  { %v1981_v49 = vadd.f32 1e-05, %v1977_v9 }
 0x998   :  { %v1976_v8 = vpop.xlane.xlu0 %1975 }
 0x999   :  { %v1980_v12 = vmul.f32 0.0625, %v1976_v8  ;;  %2765 = vrsqrt.f32 %v1981_v49 }
 0x99b   :  { %v1973_v0 = vpop.xlane.xlu1 %1972  ;;  %v1984_v2 = vadd.f32 1e-05, %v1980_v12 }
 0x99c   :  { %v1979_v11 = vmul.f32 0.0625, %v1973_v0 }
 0x99e   :  { %v1983_v5 = vadd.f32 1e-05, %v1979_v11 }
 0x99f   :  { %v1970_v16 = vpop.xlane.xlu1 %1969 }
 0x9a0   :  { %v1978_v1 = vmul.f32 0.0625, %v1970_v16 }
 0x9a2   :  { %v1982_v7 = vadd.f32 1e-05, %v1978_v1 }
 0x9a3   :  { %v2766_v21 = vpop.eup %2765 }
 0x9a4   :  { %v1989_v48 = vmul.f32 %v2766_v21, %v3637_v40 }
 0x9e5   :  { %v2011_v63 = vpop.xlane.xlu0 %2010 }
 0x9e6   :  { %v2021_v4 = vmul.f32 0.0625, %v2011_v63 }
 0x9e8   :  { %v2025_v58 = vadd.f32 1e-05, %v2021_v4 }
 0x9e9   :  { %v2014_v43 = vpop.xlane.xlu0 %2013  ;;  %v2017_v20 = vpop.xlane.xlu1 %2016 }
 0x9ea   :  { %2767 = vrsqrt.f32 %v2025_v58  ;;  %v2022_v14 = vmul.f32 0.0625, %v2014_v43  ;;  %v2023_v22 = vmul.f32 0.0625, %v2017_v20 }
 0x9eb   :  { %2769 = vrsqrt.f32 %v1982_v7 }
 0x9ec   :  { %v2026_v26 = vadd.f32 1e-05, %v2022_v14  ;;  %v2027_v29 = vadd.f32 1e-05, %v2023_v22  ;;  %2771 = vrsqrt.f32 %v1983_v5 }
 0x9ed   :  { %v2020_v18 = vpop.xlane.xlu0 %2019 }
 0x9ee   :  { %2773 = vrsqrt.f32 %v2026_v26  ;;  %v2024_v35 = vmul.f32 0.0625, %v2020_v18 }
 0x9ef   :  { %2775 = vrsqrt.f32 %v2027_v29 }
 0x9f0   :  { %2777 = vrsqrt.f32 %v1984_v2  ;;  %v2028_v36 = vadd.f32 1e-05, %v2024_v35 }
 0x9f2   :  { %2779 = vrsqrt.f32 %v2028_v36 }
 0x9f4   :  { %v2768_v47 = vpop.eup %2767 }
 0x9f5   :  { %v2033_v45 = vmul.f32 %v2768_v47, %v3637_v40  ;;  %v2770_v10 = vpop.eup %2769 }
 0x9f6   :  { %v2772_v46 = vpop.eup %2771  ;;  %v1990_v39 = vmul.f32 %v2770_v10, %v3647_v42 }
 0x9f7   :  { %v2037_v52 = vsel %vm54_vm0, %v1989_v48, %v2033_v45  ;;  %v1991_v33 = vmul.f32 %v2772_v46, %v3642_v55 }
 0x9f8   :  { %v2774_v50 = vpop.eup %2773  ;;  %v2047_v30 = vmul.f32 %v2361_v24, %v2037_v52 }
 0x9f9   :  { %v2776_v51 = vpop.eup %2775  ;;  %v2034_v13 = vmul.f32 %v2774_v50, %v3647_v42 }
 0x9fa   :  { %v2778_v53 = vpop.eup %2777  ;;  %v2035_v54 = vmul.f32 %v2776_v51, %v3642_v55 }
 0x9fb   :  { %v2038_v56 = vsel %vm54_vm0, %v1990_v39, %v2034_v13  ;;  %v1992_v38 = vmul.f32 %v2778_v53, %v3654_v32 }
 0x9fc   :  { %v2780_v57 = vpop.eup %2779  ;;  %v2048_v25 = vmul.f32 %v2361_v24, %v2038_v56  ;;  %v2039_v27 = vsel %vm54_vm0, %v1991_v33, %v2035_v54 }
 0x9fd   :  { %v2036_v15 = vmul.f32 %v2780_v57, %v3654_v32  ;;  %v2049_v59 = vmul.f32 %v2361_v24, %v2039_v27 }
 0x9fe   :  { %v2051_v60 = vpack.c.bf16 %v2048_v25, %v2047_v30 }
 0x9ff   :  { %v2040_v37 = vsel %vm54_vm0, %v1992_v38, %v2036_v15 }
 0xa00   :  { %2500 = vmatprep.mubr.msk.bf16.mxu1 %vm160_vm1, %v2051_v60  ;;  %v2050_v17 = vmul.f32 %v2361_v24, %v2040_v37 }
 0xa02   :  { %v2052_v31 = vpack.c.bf16 %v2050_v17, %v2049_v59 }
 0xa04   :  { %2501 = vmatmul.mubr.msk.bf16.vlgmr.msra.gmra.mrb[24].mxu1 %vm160_vm1, %v2052_v31 }
 0xa05   :  { %2505 = vmatpush3.bf16.msra.mxu1 %v3683_v61  ;;  %2508 = vmatprep.mubr.msk.bf16.mxu1 %vm160_vm1, %v2051_v60 }
 0xa06   :  { %2506 = vmatprep.subr.bf16.mxu1 %v2680_v28 }
 0xa09   :  { %2507 = vmatpush3.bf16.msra.mxu1 %v2680_v28 }
 0xa0c   :  { %2509 = vmatmul.mubr.msk.bf16.vlgmr.msra.gmra.mrb[28].mxu1 %vm160_vm1, %v2052_v31 }
 0xad7   :  { %v2502_v23 = vpop.f32.mrb[24].mxu1 }
 0xad8   :  { %v2372_v62 = vmul.f32 -1.442695, %v2502_v23  ;;  %v2109_v6 = vpop.f32.mrb[25].mxu1 }
 0xad9   :  { %v2370_v61 = vmul.f32 -1.442695, %v2109_v6  ;;  %v2503_v3 = vpop.f32.mrb[26].mxu1 }
 0xada   :  { %2781 = vpow2.f32 %v2372_v62  ;;  %v2373_v0 = vmul.f32 -1.442695, %v2503_v3  ;;  %v2112_v9 = vpop.f32.mrb[27].mxu1 }
 0xadb   :  { %2783 = vpow2.f32 %v2370_v61  ;;  %v2371_v8 = vmul.f32 -1.442695, %v2112_v9 }
 0xadc   :  { %2785 = vpow2.f32 %v2373_v0 }
 0xadd   :  { %2787 = vpow2.f32 %v2371_v8 }
 0xadf   :  { %v2510_v16 = vpop.f32.mrb[28].mxu1 }
 0xae0   :  { %v2174_v1 = vpop.f32.mrb[29].mxu1 }
 0xae1   :  { %v2511_v49 = vpop.f32.mrb[30].mxu1 }
 0xae2   :  { %v2177_v11 = vpop.f32.mrb[31].mxu1 }
 0xae4   :  { %v2782_v63 = vpop.eup %2781 }
 0xae5   :  { %v2784_v4 = vpop.eup %2783  ;;  %v2203_v12 = vadd.f32 1.0, %v2782_v63 }
 0xae6   :  { %v2786_v7 = vpop.eup %2785  ;;  %v2201_v58 = vadd.f32 1.0, %v2784_v4 }
 0xae7   :  { %v2788_v5 = vpop.eup %2787  ;;  %2789 = vrcp.f32 %v2203_v12  ;;  %v2204_v43 = vadd.f32 1.0, %v2786_v7 }
 0xae8   :  { %2791 = vrcp.f32 %v2201_v58  ;;  %v2202_v20 = vadd.f32 1.0, %v2788_v5 }
 0xae9   :  { %2793 = vrcp.f32 %v2204_v43 }
 0xaea   :  { %2795 = vrcp.f32 %v2202_v20 }
 0xaf1   :  { %v2790_v14 = vpop.eup %2789 }
 0xaf2   :  { %v2792_v22 = vpop.eup %2791  ;;  %v2215_v2 = vmul.f32 %v2790_v14, %v2502_v23 }
 0xaf3   :  { %v2794_v26 = vpop.eup %2793  ;;  %v2213_v29 = vmul.f32 %v2792_v22, %v2109_v6 }
 0xaf4   :  { %v2796_v18 = vpop.eup %2795  ;;  %v2216_v35 = vmul.f32 %v2794_v26, %v2503_v3  ;;  %v2219_v36 = vmul.f32 %v2510_v16, %v2215_v2 }
 0xaf5   :  { %v2214_v21 = vmul.f32 %v2796_v18, %v2112_v9  ;;  %v2217_v47 = vmul.f32 %v2213_v29, %v2174_v1 }
 0xaf6   :  { %v2220_v45 = vmul.f32 %v2511_v49, %v2216_v35 }
 0xaf7   :  { %v2218_v10 = vmul.f32 %v2214_v21, %v2177_v11 }
 0xaf8   :  { %v2222_v46 = vpack.c.bf16 %v2220_v45, %v2219_v36 }
 0xaf9   :  { %v2221_v48 = vpack.c.bf16 %v2218_v10, %v2217_v47 }
 0xafb   :  { %2520 = vmatprep.mubr.msk.bf16.mxu0 %vm1900_vm4, %v2221_v48 }
 0xafc   :  { %2521 = vmatmul.mubr.msk.bf16.vlgmr.msra.gmra.mrb[16].mxu0 %vm1900_vm4, %v2222_v46 }
 0xbcf   :  { %v2522_v50 = vpop.f32.mrb[16].mxu0 }
 0xbd0   :  { %v2312_v51 = vadd.f32 %v2522_v50, %v3642_v55  ;;  %v2295_v39 = vpop.f32.mrb[17].mxu0 }
 0xbd1   :  { %v2310_v13 = vadd.f32 %v2295_v39, %v3637_v40  ;;  %v2523_v24 = vpop.f32.mrb[18].mxu0 }
 0xbd2   :  { %2316 = vst.msk [vmem:[#allocation2 + $0x10] sm:$0xff] %vm160_vm1, %v2312_v51  ;;  %v2313_v52 = vadd.f32 %v2523_v24, %v3654_v32  ;;  %v2298_v53 = vpop.f32.mrb[19].mxu0 }
 0xbd3   :  { %2314 = vst.msk [vmem:[#allocation2] sm:$0xff] %vm160_vm1, %v2310_v13  ;;  %v2311_v54 = vadd.f32 %v2298_v53, %v3647_v42 }
 0xbd4   :  { %2317 = vst.msk [vmem:[#allocation2 + $0x18] sm:$0xff] %vm160_vm1, %v2313_v52 }
 0xbd5   :  { %2315 = vst.msk [vmem:[#allocation2 + $0x8] sm:$0xff] %vm160_vm1, %v2311_v54 }
 0xbd6   :  { %2812 = shalt.err (!%p2809_p4)
}
 0xbd7   :  { %s2813_s23 = scalar_lea.hbm %s3754_s10, 512 }
 0xbd8   :  { %p2814_p5 = scmp.ne.s32.totalorder %s3754_s10, %s2813_s23  ;;  %p2817_p6 = scmp.lt.u32.totalorder %s2813_s23, %s3754_s10 }
 0xbda   :  { %p2819_p7 = pnand %p2817_p6, %p2814_p5 }
 0xbdc   :  { %2822 = shalt.err (!%p2819_p7)
}
 0xbdd   :  { %s2840_s9 = smov 128  }
 0xbde   :  { %2329 = dma.vmem_to_hbm [thread:$0]  %s2324_s20, 512, %s3754_s10, [#allocation3], %s2840_s9, %s2840_s9, %s2831_s19  }
 0xbdf   :  { %2823 = dma.done.wait [#allocation3], 512  }
 0xbe0   :  { %2824 = vsyncadd [#allocation3], 4294966784 }
 0xbe1   :  { %2333 = vsyncpa [#allocation3], 1 }

</bundles_post_ra>
